<compile_context>
chip_gen: v5e
topology: v5e:2x2
jax: 0.10.0
libtpu: 0.0.40
codegen_flags: <defaults>
</compile_context>

<pallas_src>
import functools

import jax
import jax.numpy as jnp
import numpy as np
from jax import lax
from jax.experimental import pallas as pl
from jax.experimental.pallas import tpu as pltpu

NEG_SLOPE = 0.01   # nn.LeakyReLU default
BN_EPS = 1e-5      # nn.BatchNorm1d default


# ---------------------------------------------------------------------------
# In-kernel helpers (trace-time Python, all static shapes)
# ---------------------------------------------------------------------------
def _partial_stats(h):
    """Per-block BN partials over all rows: [[sum h], [sum h^2]] -> (2, C)."""
    s1 = jnp.sum(h, axis=0, keepdims=True)
    s2 = jnp.sum(h * h, axis=0, keepdims=True)
    return jnp.concatenate([s1, s2], axis=0)


def _bn_affine(st_ref, gamma_ref, beta_ref, inv_nt):
    """Combine per-block partials -> batch stats -> fused affine (a, c)."""
    s = jnp.sum(st_ref[...], axis=0)                      # (2, C)
    mean = s[0:1, :] * inv_nt                             # (1, C)
    var = jnp.maximum(s[1:2, :] * inv_nt - mean * mean, 0.0)
    a = gamma_ref[...] * lax.rsqrt(var + BN_EPS)          # (1, C)
    c = beta_ref[...] - mean * a                          # (1, C)
    return a, c


def _boundary_masks(bt, t):
    """Per-row masks marking the first / last time step of each sample."""
    row = lax.broadcasted_iota(jnp.int32, (bt, 1), 0) % t
    return row == 0, row == (t - 1)


def _conv3_flat(z16, w_ref, bias, mask_first, mask_last):
    """Conv1d(k=3, pad=1) on a flattened (B*T, C) bf16 block.

    Three aligned tap matmuls (bf16 operands, f32 accumulate); the +/-1 time
    shifts are applied to the tap *outputs* with pltpu.roll (XLU) and the
    wrapped / cross-sample rows are zeroed with the boundary masks.
    """
    bt = z16.shape[0]
    d0 = jnp.dot(z16, w_ref[0], preferred_element_type=jnp.float32)
    d1 = jnp.dot(z16, w_ref[1], preferred_element_type=jnp.float32)
    d2 = jnp.dot(z16, w_ref[2], preferred_element_type=jnp.float32)
    y = d1 + bias                                          # bias: (1, C) f32
    y = y + jnp.where(mask_first, 0.0, pltpu.roll(d0, shift=1, axis=0))
    y = y + jnp.where(mask_last, 0.0, pltpu.roll(d2, shift=bt - 1, axis=0))
    return y


def _resblock_flat(h, a, c, w1_ref, b1, w2_ref, b2, mask_first, mask_last):
    """BN (pre-folded affine) -> conv3 -> conv3 -> LeakyReLU -> residual."""
    yn = (h * a + c).astype(jnp.bfloat16)                  # single cast per conv
    y = _conv3_flat(yn, w1_ref, b1, mask_first, mask_last)
    y = _conv3_flat(y.astype(jnp.bfloat16), w2_ref, b2, mask_first, mask_last)
    y = jnp.where(y >= 0, y, NEG_SLOPE * y)                # LeakyReLU
    return h + y                                           # residual trunk, f32


# ---------------------------------------------------------------------------
# Pallas kernels (one block of B samples per grid step)
# ---------------------------------------------------------------------------
def _front_kernel(x_ref, wf_ref, bf_ref, h_ref, st_ref):
    # convfront: Conv1d(Cin -> C, k=1) == (B*T, Cin) @ (Cin, C)
    h = jnp.dot(x_ref[...], wf_ref[...],
                preferred_element_type=jnp.float32) + bf_ref[...]
    h_ref[...] = h.astype(h_ref.dtype)                     # bf16 carry
    st_ref[...] = _partial_stats(h)


def _res_mid_kernel(T, inv_nt, h_ref, st_ref, g_ref, be_ref,
                    w1_ref, b1_ref, w2_ref, b2_ref, ho_ref, sto_ref):
    bt, _ = h_ref.shape
    h = h_ref[...].astype(jnp.float32)
    a, c = _bn_affine(st_ref, g_ref, be_ref, inv_nt)
    mfirst, mlast = _boundary_masks(bt, T)
    hn = _resblock_flat(h, a, c, w1_ref, b1_ref[...], w2_ref, b2_ref[...],
                        mfirst, mlast)
    ho_ref[...] = hn.astype(ho_ref.dtype)                  # bf16 carry
    sto_ref[...] = _partial_stats(hn)                      # stats for next BN


def _res_last_kernel(T, inv_nt, h_ref, st_ref, g_ref, be_ref,
                     w1_ref, b1_ref, w2_ref, b2_ref, wbt_ref, bb_ref, out_ref):
    bt, C = h_ref.shape
    B = bt // T
    Th = T // 2
    h = h_ref[...].astype(jnp.float32)
    a, c = _bn_affine(st_ref, g_ref, be_ref, inv_nt)
    mfirst, mlast = _boundary_masks(bt, T)
    hn = _resblock_flat(h, a, c, w1_ref, b1_ref[...], w2_ref, b2_ref[...],
                        mfirst, mlast)
    # AdaptiveAvgPool1d(T//2) with even T == pairwise time averaging (pairs
    # never cross sample boundaries); pool first, convbehind (k=1) commutes.
    hp = (jnp.sum(hn.reshape(bt // 2, 2, C), axis=1) * 0.5).reshape(B, Th, C)
    wbt = wbt_ref[...]                                     # (end_c, C) f32
    bb = bb_ref[...]                                       # (end_c, 1) f32
    for bi in range(B):                                    # static unroll, tiny
        out_ref[bi] = lax.dot_general(
            wbt, hp[bi], dimension_numbers=(((1,), (1,)), ((), ())),
            preferred_element_type=jnp.float32) + bb       # (end_c, Th), lane-dense


# ---------------------------------------------------------------------------
# Wrapper
# ---------------------------------------------------------------------------
def mfl_net_pallas(x_nct, params, block_b=8):
    """x_nct: (N, C_in, T), exactly like the PyTorch module input."""
    wf, bf, gammas, betas, w1, b1, w2, b2, wb, bb = params
    N, Cin, T = x_nct.shape
    C = wf.shape[1]
    end_c = wb.shape[1]
    assert T % 2 == 0, "AdaptiveAvgPool1d(T//2) fusion assumes even T"
    # TODO(synk): odd-T AdaptiveAvgPool1d (overlapping windows) not implemented.
    Th = T // 2

    # Samples per grid step: largest divisor of N <= block_b with B*T % 8 == 0.
    B = N
    for cand in range(min(block_b, N), 0, -1):
        if N % cand == 0 and (cand * T) % 8 == 0:
            B = cand
            break
    nblk = N // B
    BT = B * T
    inv_nt = 1.0 / float(N * T)

    # Wrapper-side layout prep (input transpose kept here; smallest tensor).
    xt = jnp.transpose(x_nct, (0, 2, 1)).reshape(N * T, Cin).astype(jnp.bfloat16)
    wfb = wf.astype(jnp.bfloat16)
    bf2 = bf.reshape(1, C).astype(jnp.float32)
    w1b = w1.astype(jnp.bfloat16)          # bf16 MXU operands for k=3 convs
    w2b = w2.astype(jnp.bfloat16)
    wbt = wb.T.astype(jnp.float32)         # (end_c, C) for the fused tail dot
    bb2 = bb.reshape(end_c, 1).astype(jnp.float32)

    cp = pltpu.CompilerParams(
        dimension_semantics=("parallel",),          # megacore sharding on v7x
        vmem_limit_bytes=32 * 1024 * 1024)          # fits v5e/v6e/v7x at B<=16

    bs_x = pl.BlockSpec((BT, Cin), lambda i: (i, 0))
    bs_h = pl.BlockSpec((BT, C), lambda i: (i, 0))
    bs_st_out = pl.BlockSpec((None, 2, C), lambda i: (i, 0, 0))
    bs_st_in = pl.BlockSpec((nblk, 2, C), lambda i: (0, 0, 0))
    bs_out = pl.BlockSpec((B, end_c, Th), lambda i: (i, 0, 0))

    def cw2(r, c_):
        return pl.BlockSpec((r, c_), lambda i: (0, 0))

    def cw3(a_, b_, c_):
        return pl.BlockSpec((a_, b_, c_), lambda i: (0, 0, 0))

    h_shape = jax.ShapeDtypeStruct((N * T, C), jnp.bfloat16)   # bf16 inter-phase carry
    st_shape = jax.ShapeDtypeStruct((nblk, 2, C), jnp.float32)

    # ---- phase 1: convfront + BN partials for resblock 1 -----------------
    h, st = pl.pallas_call(
        _front_kernel,
        grid=(nblk,),
        in_specs=[bs_x, cw2(Cin, C), cw2(1, C)],
        out_specs=[bs_h, bs_st_out],
        out_shape=[h_shape, st_shape],
        compiler_params=cp,
    )(xt, wfb, bf2)

    # ---- phase 2: resblocks 1 & 2 (each emits partials for the next BN) --
    for r in range(2):
        h, st = pl.pallas_call(
            functools.partial(_res_mid_kernel, T, inv_nt),
            grid=(nblk,),
            in_specs=[bs_h, bs_st_in, cw2(1, C), cw2(1, C),
                      cw3(3, C, C), cw2(1, C), cw3(3, C, C), cw2(1, C)],
            out_specs=[bs_h, bs_st_out],
            out_shape=[h_shape, st_shape],
            compiler_params=cp,
        )(h, st, gammas[r].reshape(1, C), betas[r].reshape(1, C),
          w1b[r], b1[r].reshape(1, C), w2b[r], b2[r].reshape(1, C))

    # ---- phase 3: resblock 3 fused with pool + convbehind (lane-dense out)
    out = pl.pallas_call(
        functools.partial(_res_last_kernel, T, inv_nt),
        grid=(nblk,),
        in_specs=[bs_h, bs_st_in, cw2(1, C), cw2(1, C),
                  cw3(3, C, C), cw2(1, C), cw3(3, C, C), cw2(1, C),
                  cw2(end_c, C), cw2(end_c, 1)],
        out_specs=bs_out,
        out_shape=jax.ShapeDtypeStruct((N, end_c, Th), jnp.float32),
        compiler_params=cp,
    )(h, st, gammas[2].reshape(1, C), betas[2].reshape(1, C),
      w1b[2], b1[2].reshape(1, C), w2b[2], b2[2].reshape(1, C), wbt, bb2)

    return out                                              # (N, end_c, T//2)


# ---------------------------------------------------------------------------
# Deterministic parameter init (shapes follow the module __init__).
#   k=1 conv:  (Cin, Cout)              (== torch W[:, :, 0].T)
#   k=3 conv:  (3 taps, Cin, Cout)      (tap-major, == torch W[:, :, t].T)
# ---------------------------------------------------------------------------
def init_params(key, cin, cout, end_c, k_in=3):
    ks = jax.random.split(key, 8)

    def u(k, shape, fan):
        s = 1.0 / np.sqrt(fan)
        return jax.random.uniform(k, shape, jnp.float32, -s, s)

    wf = u(ks[0], (cin, cout), cin)
    bf = u(ks[1], (cout,), cin)
    gammas = jnp.ones((3, cout), jnp.float32)            # BN weight
    betas = jnp.zeros((3, cout), jnp.float32)            # BN bias
    w1 = u(ks[2], (3, k_in, cout, cout), cout * k_in)    # [block, tap, in, out]
    b1 = u(ks[3], (3, cout), cout * k_in)
    w2 = u(ks[4], (3, k_in, cout, cout), cout * k_in)
    b2 = u(ks[5], (3, cout), cout * k_in)
    wb = u(ks[6], (cout, end_c), cout)
    bb = u(ks[7], (end_c,), cout)
    return (wf, bf, gammas, betas, w1, b1, w2, b2, wb, bb)


# ---------------------------------------------------------------------------
# Pure-JAX f32 reference (mirrors the torch op order: convbehind, then pool).
# ---------------------------------------------------------------------------
def mfl_net_ref(x_nct, params):
    wf, bf, gammas, betas, w1, b1, w2, b2, wb, bb = params
    h = jnp.einsum("nct,cd->ntd", x_nct.astype(jnp.float32), wf) + bf

    def conv3(z, w, b):
        T = z.shape[1]
        zp = jnp.pad(z, ((0, 0), (1, 1), (0, 0)))
        return sum(jnp.einsum("ntc,cd->ntd", zp[:, k:k + T], w[k])
                   for k in range(3)) + b

    for r in range(3):
        mean = h.mean(axis=(0, 1), keepdims=True)
        var = ((h - mean) ** 2).mean(axis=(0, 1), keepdims=True)
        yn = (h - mean) / jnp.sqrt(var + BN_EPS) * gammas[r] + betas[r]
        y = conv3(yn, w1[r], b1[r])
        y = conv3(y, w2[r], b2[r])
        y = jnp.where(y >= 0, y, NEG_SLOPE * y)
        h = h + y

    z = jnp.einsum("ntc,ce->nte", h, wb) + bb            # convbehind
    N, T, E = z.shape
    z = z.reshape(N, T // 2, 2, E).mean(axis=2)          # AdaptiveAvgPool1d
    return jnp.transpose(z, (0, 2, 1))                   # (N, end_c, T//2)


if __name__ == "__main__":
    # Small shapes consistent with the module (defaults 19, 200, 128 scaled down).
    N, CIN, T, COUT, ENDC = 2, 4, 16, 32, 1

    key = jax.random.PRNGKey(0)
    kx, kp = jax.random.split(key)
    x = jax.random.normal(kx, (N, CIN, T), jnp.float32)   # torch layout (N, C, T)
    params = init_params(kp, CIN, COUT, ENDC)

    fwd = jax.jit(mfl_net_pallas)
    out = jax.block_until_ready(fwd(x, params))           # (N, 1, T//2)
    ref = jax.block_until_ready(mfl_net_ref(x, params))

    assert out.shape == (N, ENDC, T // 2), out.shape
    # Loose tolerance: bf16 conv operands + bf16 inter-phase activation carry
    # (f32 accumulation / BN / residual math) -- intentional precision trade.
    np.testing.assert_allclose(np.asarray(out), np.asarray(ref),
                               rtol=5e-2, atol=5e-2)
    print("KERNEL_OK")
</pallas_src>

<mosaic_0001>
module attributes {stable_mosaic.version = 11 : i64} {
  func.func @_res_mid_kernel(%arg0: i32, %arg1: memref<32x32xbf16, #tpu.memory_space<vmem>>, %arg2: memref<1x2x32xf32, #tpu.memory_space<vmem>>, %arg3: memref<1x32xf32, #tpu.memory_space<vmem>>, %arg4: memref<1x32xf32, #tpu.memory_space<vmem>>, %arg5: memref<3x32x32xbf16, #tpu.memory_space<vmem>>, %arg6: memref<1x32xf32, #tpu.memory_space<vmem>>, %arg7: memref<3x32x32xbf16, #tpu.memory_space<vmem>>, %arg8: memref<1x32xf32, #tpu.memory_space<vmem>>, %arg9: memref<32x32xbf16, #tpu.memory_space<vmem>>, %arg10: memref<1x2x32xf32, #tpu.memory_space<vmem>>) attributes {dimension_semantics = [#tpu.dimension_semantics<parallel>], iteration_bounds = array<i64: 1>, scalar_prefetch = 0 : i64, scratch_operands = 0 : i64, tpu.core_type = #tpu.core_type<tc>, window_params = [{transform_indices = @transform_0, window_bounds = array<i64: 32, 32>}, {pipeline_mode = #tpu.pipeline_mode<synchronous>, transform_indices = @transform_1, window_bounds = array<i64: 1, 2, 32>}, {pipeline_mode = #tpu.pipeline_mode<synchronous>, transform_indices = @transform_2, window_bounds = array<i64: 1, 32>}, {pipeline_mode = #tpu.pipeline_mode<synchronous>, transform_indices = @transform_3, window_bounds = array<i64: 1, 32>}, {pipeline_mode = #tpu.pipeline_mode<synchronous>, transform_indices = @transform_4, window_bounds = array<i64: 3, 32, 32>}, {pipeline_mode = #tpu.pipeline_mode<synchronous>, transform_indices = @transform_5, window_bounds = array<i64: 1, 32>}, {pipeline_mode = #tpu.pipeline_mode<synchronous>, transform_indices = @transform_6, window_bounds = array<i64: 3, 32, 32>}, {pipeline_mode = #tpu.pipeline_mode<synchronous>, transform_indices = @transform_7, window_bounds = array<i64: 1, 32>}, {transform_indices = @transform_8, window_bounds = array<i64: 32, 32>}, {transform_indices = @transform_9, window_bounds = array<i64: 1, 2, 32>}]} {
    %c0 = arith.constant 0 : index
    %c0_0 = arith.constant 0 : index
    %0 = vector.load %arg1[%c0, %c0_0] : memref<32x32xbf16, #tpu.memory_space<vmem>>, vector<32x32xbf16>
    %1 = arith.extf %0 : vector<32x32xbf16> to vector<32x32xf32>
    %c0_1 = arith.constant 0 : index
    %c0_2 = arith.constant 0 : index
    %c0_3 = arith.constant 0 : index
    %2 = vector.load %arg2[%c0_1, %c0_2, %c0_3] : memref<1x2x32xf32, #tpu.memory_space<vmem>>, vector<1x2x32xf32>
    %cst = arith.constant dense<0.000000e+00> : vector<2x32xf32>
    %3 = vector.multi_reduction <add>, %2, %cst [0] : vector<1x2x32xf32> to vector<2x32xf32>
    %4 = vector.extract_strided_slice %3 {offsets = [0, 0], sizes = [1, 32], strides = [1, 1]} : vector<2x32xf32> to vector<1x32xf32>
    %cst_4 = arith.constant 3.125000e-02 : f32
    %5 = vector.broadcast %cst_4 : f32 to vector<1x32xf32>
    %6 = arith.mulf %4, %5 : vector<1x32xf32>
    %7 = vector.extract_strided_slice %3 {offsets = [1, 0], sizes = [1, 32], strides = [1, 1]} : vector<2x32xf32> to vector<1x32xf32>
    %cst_5 = arith.constant 3.125000e-02 : f32
    %8 = vector.broadcast %cst_5 : f32 to vector<1x32xf32>
    %9 = arith.mulf %7, %8 : vector<1x32xf32>
    %10 = arith.mulf %6, %6 : vector<1x32xf32>
    %11 = arith.subf %9, %10 : vector<1x32xf32>
    %cst_6 = arith.constant 0.000000e+00 : f32
    %12 = vector.broadcast %cst_6 : f32 to vector<1x32xf32>
    %13 = arith.maximumf %11, %12 : vector<1x32xf32>
    %c0_7 = arith.constant 0 : index
    %c0_8 = arith.constant 0 : index
    %14 = vector.load %arg3[%c0_7, %c0_8] : memref<1x32xf32, #tpu.memory_space<vmem>>, vector<1x32xf32>
    %cst_9 = arith.constant 9.99999974E-6 : f32
    %15 = vector.broadcast %cst_9 : f32 to vector<1x32xf32>
    %16 = arith.addf %13, %15 : vector<1x32xf32>
    %17 = math.rsqrt %16 : vector<1x32xf32>
    %18 = arith.mulf %14, %17 : vector<1x32xf32>
    %c0_10 = arith.constant 0 : index
    %c0_11 = arith.constant 0 : index
    %19 = vector.load %arg4[%c0_10, %c0_11] : memref<1x32xf32, #tpu.memory_space<vmem>>, vector<1x32xf32>
    %20 = arith.mulf %6, %18 : vector<1x32xf32>
    %21 = arith.subf %19, %20 : vector<1x32xf32>
    %22 = tpu.iota {dimensions = array<i32: 0>} : vector<32x1xi32>
    %c16_i32 = arith.constant 16 : i32
    %c0_i32 = arith.constant 0 : i32
    %23 = arith.cmpi eq, %c16_i32, %c0_i32 : i32
    %c1_i32 = arith.constant 1 : i32
    %24 = arith.select %23, %c1_i32, %c16_i32 : i32
    %25 = vector.broadcast %24 : i32 to vector<32x1xi32>
    %26 = arith.remsi %22, %25 : vector<32x1xi32>
    %c0_i32_12 = arith.constant 0 : i32
    %27 = vector.broadcast %c0_i32_12 : i32 to vector<32x1xi32>
    %28 = arith.cmpi ne, %26, %27 : vector<32x1xi32>
    %c0_i32_13 = arith.constant 0 : i32
    %29 = vector.broadcast %c0_i32_13 : i32 to vector<32x1xi32>
    %30 = arith.cmpi slt, %26, %29 : vector<32x1xi32>
    %c0_i32_14 = arith.constant 0 : i32
    %31 = arith.cmpi slt, %24, %c0_i32_14 : i32
    %32 = vector.broadcast %31 : i1 to vector<32x1xi1>
    %33 = vector.broadcast %32 : vector<32x1xi1> to vector<32x1xi1>
    %34 = arith.xori %30, %33 : vector<32x1xi1>
    %35 = arith.andi %34, %28 : vector<32x1xi1>
    %36 = vector.broadcast %24 : i32 to vector<32x1xi32>
    %37 = arith.addi %26, %36 : vector<32x1xi32>
    %38 = arith.select %35, %37, %26 : vector<32x1xi1>, vector<32x1xi32>
    %c0_i32_15 = arith.constant 0 : i32
    %39 = vector.broadcast %c0_i32_15 : i32 to vector<32x1xi32>
    %40 = arith.cmpi eq, %38, %39 : vector<32x1xi32>
    %c15_i32 = arith.constant 15 : i32
    %41 = vector.broadcast %c15_i32 : i32 to vector<32x1xi32>
    %42 = arith.cmpi eq, %38, %41 : vector<32x1xi32>
    %c0_16 = arith.constant 0 : index
    %c0_17 = arith.constant 0 : index
    %43 = vector.load %arg6[%c0_16, %c0_17] : memref<1x32xf32, #tpu.memory_space<vmem>>, vector<1x32xf32>
    %c0_18 = arith.constant 0 : index
    %c0_19 = arith.constant 0 : index
    %44 = vector.load %arg8[%c0_18, %c0_19] : memref<1x32xf32, #tpu.memory_space<vmem>>, vector<1x32xf32>
    %45 = vector.broadcast %18 : vector<1x32xf32> to vector<32x32xf32>
    %46 = arith.mulf %1, %45 : vector<32x32xf32>
    %47 = vector.broadcast %21 : vector<1x32xf32> to vector<32x32xf32>
    %48 = arith.addf %46, %47 : vector<32x32xf32>
    %49 = arith.truncf %48 : vector<32x32xf32> to vector<32x32xbf16>
    %c0_20 = arith.constant 0 : index
    %c0_21 = arith.constant 0 : index
    %c0_22 = arith.constant 0 : index
    %50 = vector.load %arg5[%c0_20, %c0_21, %c0_22] : memref<3x32x32xbf16, #tpu.memory_space<vmem>>, vector<1x32x32xbf16>
    %51 = vector.shape_cast %50 : vector<1x32x32xbf16> to vector<32x32xbf16>
    %cst_23 = arith.constant dense<0.000000e+00> : vector<32x32xf32>
    %52 = tpu.matmul %49, %51, %cst_23 {dimension_numbers = #tpu.dot_dimension_numbers<[1], [0], [0], [1], [0, 0, 1, 1], [], []>} : vector<32x32xbf16>, vector<32x32xbf16>, vector<32x32xf32> -> vector<32x32xf32>
    %c1 = arith.constant 1 : index
    %c0_24 = arith.constant 0 : index
    %c0_25 = arith.constant 0 : index
    %53 = vector.load %arg5[%c1, %c0_24, %c0_25] : memref<3x32x32xbf16, #tpu.memory_space<vmem>>, vector<1x32x32xbf16>
    %54 = vector.shape_cast %53 : vector<1x32x32xbf16> to vector<32x32xbf16>
    %cst_26 = arith.constant dense<0.000000e+00> : vector<32x32xf32>
    %55 = tpu.matmul %49, %54, %cst_26 {dimension_numbers = #tpu.dot_dimension_numbers<[1], [0], [0], [1], [0, 0, 1, 1], [], []>} : vector<32x32xbf16>, vector<32x32xbf16>, vector<32x32xf32> -> vector<32x32xf32>
    %c2 = arith.constant 2 : index
    %c0_27 = arith.constant 0 : index
    %c0_28 = arith.constant 0 : index
    %56 = vector.load %arg5[%c2, %c0_27, %c0_28] : memref<3x32x32xbf16, #tpu.memory_space<vmem>>, vector<1x32x32xbf16>
    %57 = vector.shape_cast %56 : vector<1x32x32xbf16> to vector<32x32xbf16>
    %cst_29 = arith.constant dense<0.000000e+00> : vector<32x32xf32>
    %58 = tpu.matmul %49, %57, %cst_29 {dimension_numbers = #tpu.dot_dimension_numbers<[1], [0], [0], [1], [0, 0, 1, 1], [], []>} : vector<32x32xbf16>, vector<32x32xbf16>, vector<32x32xf32> -> vector<32x32xf32>
    %59 = vector.broadcast %43 : vector<1x32xf32> to vector<32x32xf32>
    %60 = arith.addf %55, %59 : vector<32x32xf32>
    %c1_i32_30 = arith.constant 1 : i32
    %61 = tpu.dynamic_rotate %52 by %c1_i32_30 dim 0 : vector<32x32xf32>, i32 -> vector<32x32xf32>
    %cst_31 = arith.constant 0.000000e+00 : f32
    %62 = vector.shape_cast %40 : vector<32x1xi1> to vector<32x1xi1>
    %63 = vector.broadcast %62 : vector<32x1xi1> to vector<32x32xi1>
    %64 = vector.broadcast %cst_31 : f32 to vector<32x32xf32>
    %65 = arith.select %63, %64, %61 : vector<32x32xi1>, vector<32x32xf32>
    %66 = arith.addf %60, %65 : vector<32x32xf32>
    %c31_i32 = arith.constant 31 : i32
    %67 = tpu.dynamic_rotate %58 by %c31_i32 dim 0 : vector<32x32xf32>, i32 -> vector<32x32xf32>
    %cst_32 = arith.constant 0.000000e+00 : f32
    %68 = vector.shape_cast %42 : vector<32x1xi1> to vector<32x1xi1>
    %69 = vector.broadcast %68 : vector<32x1xi1> to vector<32x32xi1>
    %70 = vector.broadcast %cst_32 : f32 to vector<32x32xf32>
    %71 = arith.select %69, %70, %67 : vector<32x32xi1>, vector<32x32xf32>
    %72 = arith.addf %66, %71 : vector<32x32xf32>
    %73 = arith.truncf %72 : vector<32x32xf32> to vector<32x32xbf16>
    %c0_33 = arith.constant 0 : index
    %c0_34 = arith.constant 0 : index
    %c0_35 = arith.constant 0 : index
    %74 = vector.load %arg7[%c0_33, %c0_34, %c0_35] : memref<3x32x32xbf16, #tpu.memory_space<vmem>>, vector<1x32x32xbf16>
    %75 = vector.shape_cast %74 : vector<1x32x32xbf16> to vector<32x32xbf16>
    %cst_36 = arith.constant dense<0.000000e+00> : vector<32x32xf32>
    %76 = tpu.matmul %73, %75, %cst_36 {dimension_numbers = #tpu.dot_dimension_numbers<[1], [0], [0], [1], [0, 0, 1, 1], [], []>} : vector<32x32xbf16>, vector<32x32xbf16>, vector<32x32xf32> -> vector<32x32xf32>
    %c1_37 = arith.constant 1 : index
    %c0_38 = arith.constant 0 : index
    %c0_39 = arith.constant 0 : index
    %77 = vector.load %arg7[%c1_37, %c0_38, %c0_39] : memref<3x32x32xbf16, #tpu.memory_space<vmem>>, vector<1x32x32xbf16>
    %78 = vector.shape_cast %77 : vector<1x32x32xbf16> to vector<32x32xbf16>
    %cst_40 = arith.constant dense<0.000000e+00> : vector<32x32xf32>
    %79 = tpu.matmul %73, %78, %cst_40 {dimension_numbers = #tpu.dot_dimension_numbers<[1], [0], [0], [1], [0, 0, 1, 1], [], []>} : vector<32x32xbf16>, vector<32x32xbf16>, vector<32x32xf32> -> vector<32x32xf32>
    %c2_41 = arith.constant 2 : index
    %c0_42 = arith.constant 0 : index
    %c0_43 = arith.constant 0 : index
    %80 = vector.load %arg7[%c2_41, %c0_42, %c0_43] : memref<3x32x32xbf16, #tpu.memory_space<vmem>>, vector<1x32x32xbf16>
    %81 = vector.shape_cast %80 : vector<1x32x32xbf16> to vector<32x32xbf16>
    %cst_44 = arith.constant dense<0.000000e+00> : vector<32x32xf32>
    %82 = tpu.matmul %73, %81, %cst_44 {dimension_numbers = #tpu.dot_dimension_numbers<[1], [0], [0], [1], [0, 0, 1, 1], [], []>} : vector<32x32xbf16>, vector<32x32xbf16>, vector<32x32xf32> -> vector<32x32xf32>
    %83 = vector.broadcast %44 : vector<1x32xf32> to vector<32x32xf32>
    %84 = arith.addf %79, %83 : vector<32x32xf32>
    %c1_i32_45 = arith.constant 1 : i32
    %85 = tpu.dynamic_rotate %76 by %c1_i32_45 dim 0 : vector<32x32xf32>, i32 -> vector<32x32xf32>
    %cst_46 = arith.constant 0.000000e+00 : f32
    %86 = vector.shape_cast %40 : vector<32x1xi1> to vector<32x1xi1>
    %87 = vector.broadcast %86 : vector<32x1xi1> to vector<32x32xi1>
    %88 = vector.broadcast %cst_46 : f32 to vector<32x32xf32>
    %89 = arith.select %87, %88, %85 : vector<32x32xi1>, vector<32x32xf32>
    %90 = arith.addf %84, %89 : vector<32x32xf32>
    %c31_i32_47 = arith.constant 31 : i32
    %91 = tpu.dynamic_rotate %82 by %c31_i32_47 dim 0 : vector<32x32xf32>, i32 -> vector<32x32xf32>
    %cst_48 = arith.constant 0.000000e+00 : f32
    %92 = vector.shape_cast %42 : vector<32x1xi1> to vector<32x1xi1>
    %93 = vector.broadcast %92 : vector<32x1xi1> to vector<32x32xi1>
    %94 = vector.broadcast %cst_48 : f32 to vector<32x32xf32>
    %95 = arith.select %93, %94, %91 : vector<32x32xi1>, vector<32x32xf32>
    %96 = arith.addf %90, %95 : vector<32x32xf32>
    %cst_49 = arith.constant 0.000000e+00 : f32
    %97 = vector.broadcast %cst_49 : f32 to vector<32x32xf32>
    %98 = arith.cmpf oge, %96, %97 : vector<32x32xf32>
    %cst_50 = arith.constant 0.00999999977 : f32
    %99 = vector.broadcast %cst_50 : f32 to vector<32x32xf32>
    %100 = arith.mulf %99, %96 : vector<32x32xf32>
    %101 = arith.select %98, %96, %100 : vector<32x32xi1>, vector<32x32xf32>
    %102 = arith.addf %1, %101 : vector<32x32xf32>
    %103 = arith.truncf %102 : vector<32x32xf32> to vector<32x32xbf16>
    %c0_51 = arith.constant 0 : index
    %c0_52 = arith.constant 0 : index
    %104 = vector.load %arg9[%c0_51, %c0_52] : memref<32x32xbf16, #tpu.memory_space<vmem>>, vector<32x32xbf16>
    tpu.vector_store %arg9[%c0_51, %c0_52], %103 {strides = array<i32>} : memref<32x32xbf16, #tpu.memory_space<vmem>>, vector<32x32xbf16>,
    %cst_53 = arith.constant dense<0.000000e+00> : vector<32xf32>
    %105 = vector.multi_reduction <add>, %102, %cst_53 [0] : vector<32x32xf32> to vector<32xf32>
    %106 = vector.shape_cast %105 : vector<32xf32> to vector<1x32xf32>
    %107 = arith.mulf %102, %102 : vector<32x32xf32>
    %cst_54 = arith.constant dense<0.000000e+00> : vector<32xf32>
    %108 = vector.multi_reduction <add>, %107, %cst_54 [0] : vector<32x32xf32> to vector<32xf32>
    %109 = vector.shape_cast %108 : vector<32xf32> to vector<1x32xf32>
    %110 = tpu.concatenate %106, %109 in 0 : vector<1x32xf32>, vector<1x32xf32> -> vector<2x32xf32>
    %c0_55 = arith.constant 0 : index
    %c0_56 = arith.constant 0 : index
    %c0_57 = arith.constant 0 : index
    %111 = vector.load %arg10[%c0_55, %c0_56, %c0_57] : memref<1x2x32xf32, #tpu.memory_space<vmem>>, vector<1x2x32xf32>
    %112 = vector.shape_cast %111 : vector<1x2x32xf32> to vector<2x32xf32>
    %113 = vector.shape_cast %110 : vector<2x32xf32> to vector<1x2x32xf32>
    tpu.vector_store %arg10[%c0_55, %c0_56, %c0_57], %113 {strides = array<i32>} : memref<1x2x32xf32, #tpu.memory_space<vmem>>, vector<1x2x32xf32>,
    return
  }
  func.func @transform_0(%arg0: i32) -> (i32, i32) {
    %c0_i32 = arith.constant 0 : i32
    %c0_i32_0 = arith.constant 0 : i32
    return %arg0, %c0_i32 : i32, i32
  }
  func.func @transform_1(%arg0: i32) -> (i32, i32, i32) {
    %c0_i32 = arith.constant 0 : i32
    %c0_i32_0 = arith.constant 0 : i32
    %c0_i32_1 = arith.constant 0 : i32
    %c0_i32_2 = arith.constant 0 : i32
    return %c0_i32, %c0_i32_0, %c0_i32_1 : i32, i32, i32
  }
  func.func @transform_2(%arg0: i32) -> (i32, i32) {
    %c0_i32 = arith.constant 0 : i32
    %c0_i32_0 = arith.constant 0 : i32
    %c0_i32_1 = arith.constant 0 : i32
    return %c0_i32, %c0_i32_0 : i32, i32
  }
  func.func @transform_3(%arg0: i32) -> (i32, i32) {
    %c0_i32 = arith.constant 0 : i32
    %c0_i32_0 = arith.constant 0 : i32
    %c0_i32_1 = arith.constant 0 : i32
    return %c0_i32, %c0_i32_0 : i32, i32
  }
  func.func @transform_4(%arg0: i32) -> (i32, i32, i32) {
    %c0_i32 = arith.constant 0 : i32
    %c0_i32_0 = arith.constant 0 : i32
    %c0_i32_1 = arith.constant 0 : i32
    %c0_i32_2 = arith.constant 0 : i32
    return %c0_i32, %c0_i32_0, %c0_i32_1 : i32, i32, i32
  }
  func.func @transform_5(%arg0: i32) -> (i32, i32) {
    %c0_i32 = arith.constant 0 : i32
    %c0_i32_0 = arith.constant 0 : i32
    %c0_i32_1 = arith.constant 0 : i32
    return %c0_i32, %c0_i32_0 : i32, i32
  }
  func.func @transform_6(%arg0: i32) -> (i32, i32, i32) {
    %c0_i32 = arith.constant 0 : i32
    %c0_i32_0 = arith.constant 0 : i32
    %c0_i32_1 = arith.constant 0 : i32
    %c0_i32_2 = arith.constant 0 : i32
    return %c0_i32, %c0_i32_0, %c0_i32_1 : i32, i32, i32
  }
  func.func @transform_7(%arg0: i32) -> (i32, i32) {
    %c0_i32 = arith.constant 0 : i32
    %c0_i32_0 = arith.constant 0 : i32
    %c0_i32_1 = arith.constant 0 : i32
    return %c0_i32, %c0_i32_0 : i32, i32
  }
  func.func @transform_8(%arg0: i32) -> (i32, i32) {
    %c0_i32 = arith.constant 0 : i32
    %c0_i32_0 = arith.constant 0 : i32
    return %arg0, %c0_i32 : i32, i32
  }
  func.func @transform_9(%arg0: i32) -> (i32, i32, i32) {
    %c0_i32 = arith.constant 0 : i32
    %c0_i32_0 = arith.constant 0 : i32
    %c0_i32_1 = arith.constant 0 : i32
    return %arg0, %c0_i32, %c0_i32_0 : i32, i32, i32
  }
}

module attributes {stable_mosaic.version = 11 : i64} {
  func.func @_front_kernel(%arg0: i32, %arg1: memref<32x4xbf16, #tpu.memory_space<vmem>>, %arg2: memref<4x32xbf16, #tpu.memory_space<vmem>>, %arg3: memref<1x32xf32, #tpu.memory_space<vmem>>, %arg4: memref<32x32xbf16, #tpu.memory_space<vmem>>, %arg5: memref<1x2x32xf32, #tpu.memory_space<vmem>>) attributes {dimension_semantics = [#tpu.dimension_semantics<parallel>], iteration_bounds = array<i64: 1>, scalar_prefetch = 0 : i64, scratch_operands = 0 : i64, tpu.core_type = #tpu.core_type<tc>, window_params = [{transform_indices = @transform_0, window_bounds = array<i64: 32, 4>}, {pipeline_mode = #tpu.pipeline_mode<synchronous>, transform_indices = @transform_1, window_bounds = array<i64: 4, 32>}, {pipeline_mode = #tpu.pipeline_mode<synchronous>, transform_indices = @transform_2, window_bounds = array<i64: 1, 32>}, {transform_indices = @transform_3, window_bounds = array<i64: 32, 32>}, {transform_indices = @transform_4, window_bounds = array<i64: 1, 2, 32>}]} {
    %c0 = arith.constant 0 : index
    %c0_0 = arith.constant 0 : index
    %0 = vector.load %arg1[%c0, %c0_0] : memref<32x4xbf16, #tpu.memory_space<vmem>>, vector<32x4xbf16>
    %c0_1 = arith.constant 0 : index
    %c0_2 = arith.constant 0 : index
    %1 = vector.load %arg2[%c0_1, %c0_2] : memref<4x32xbf16, #tpu.memory_space<vmem>>, vector<4x32xbf16>
    %cst = arith.constant dense<0.000000e+00> : vector<32x32xf32>
    %2 = tpu.matmul %0, %1, %cst {dimension_numbers = #tpu.dot_dimension_numbers<[1], [0], [0], [1], [0, 0, 1, 1], [], []>} : vector<32x4xbf16>, vector<4x32xbf16>, vector<32x32xf32> -> vector<32x32xf32>
    %c0_3 = arith.constant 0 : index
    %c0_4 = arith.constant 0 : index
    %3 = vector.load %arg3[%c0_3, %c0_4] : memref<1x32xf32, #tpu.memory_space<vmem>>, vector<1x32xf32>
    %4 = vector.broadcast %3 : vector<1x32xf32> to vector<32x32xf32>
    %5 = arith.addf %2, %4 : vector<32x32xf32>
    %6 = arith.truncf %5 : vector<32x32xf32> to vector<32x32xbf16>
    %c0_5 = arith.constant 0 : index
    %c0_6 = arith.constant 0 : index
    %7 = vector.load %arg4[%c0_5, %c0_6] : memref<32x32xbf16, #tpu.memory_space<vmem>>, vector<32x32xbf16>
    tpu.vector_store %arg4[%c0_5, %c0_6], %6 {strides = array<i32>} : memref<32x32xbf16, #tpu.memory_space<vmem>>, vector<32x32xbf16>,
    %cst_7 = arith.constant dense<0.000000e+00> : vector<32xf32>
    %8 = vector.multi_reduction <add>, %5, %cst_7 [0] : vector<32x32xf32> to vector<32xf32>
    %9 = vector.shape_cast %8 : vector<32xf32> to vector<1x32xf32>
    %10 = arith.mulf %5, %5 : vector<32x32xf32>
    %cst_8 = arith.constant dense<0.000000e+00> : vector<32xf32>
    %11 = vector.multi_reduction <add>, %10, %cst_8 [0] : vector<32x32xf32> to vector<32xf32>
    %12 = vector.shape_cast %11 : vector<32xf32> to vector<1x32xf32>
    %13 = tpu.concatenate %9, %12 in 0 : vector<1x32xf32>, vector<1x32xf32> -> vector<2x32xf32>
    %c0_9 = arith.constant 0 : index
    %c0_10 = arith.constant 0 : index
    %c0_11 = arith.constant 0 : index
    %14 = vector.load %arg5[%c0_9, %c0_10, %c0_11] : memref<1x2x32xf32, #tpu.memory_space<vmem>>, vector<1x2x32xf32>
    %15 = vector.shape_cast %14 : vector<1x2x32xf32> to vector<2x32xf32>
    %16 = vector.shape_cast %13 : vector<2x32xf32> to vector<1x2x32xf32>
    tpu.vector_store %arg5[%c0_9, %c0_10, %c0_11], %16 {strides = array<i32>} : memref<1x2x32xf32, #tpu.memory_space<vmem>>, vector<1x2x32xf32>,
    return
  }
  func.func @transform_0(%arg0: i32) -> (i32, i32) {
    %c0_i32 = arith.constant 0 : i32
    %c0_i32_0 = arith.constant 0 : i32
    return %arg0, %c0_i32 : i32, i32
  }
  func.func @transform_1(%arg0: i32) -> (i32, i32) {
    %c0_i32 = arith.constant 0 : i32
    %c0_i32_0 = arith.constant 0 : i32
    %c0_i32_1 = arith.constant 0 : i32
    return %c0_i32, %c0_i32_0 : i32, i32
  }
  func.func @transform_2(%arg0: i32) -> (i32, i32) {
    %c0_i32 = arith.constant 0 : i32
    %c0_i32_0 = arith.constant 0 : i32
    %c0_i32_1 = arith.constant 0 : i32
    return %c0_i32, %c0_i32_0 : i32, i32
  }
  func.func @transform_3(%arg0: i32) -> (i32, i32) {
    %c0_i32 = arith.constant 0 : i32
    %c0_i32_0 = arith.constant 0 : i32
    return %arg0, %c0_i32 : i32, i32
  }
  func.func @transform_4(%arg0: i32) -> (i32, i32, i32) {
    %c0_i32 = arith.constant 0 : i32
    %c0_i32_0 = arith.constant 0 : i32
    %c0_i32_1 = arith.constant 0 : i32
    return %arg0, %c0_i32, %c0_i32_0 : i32, i32, i32
  }
}

module attributes {stable_mosaic.version = 11 : i64} {
  func.func @_res_last_kernel(%arg0: i32, %arg1: memref<32x32xbf16, #tpu.memory_space<vmem>>, %arg2: memref<1x2x32xf32, #tpu.memory_space<vmem>>, %arg3: memref<1x32xf32, #tpu.memory_space<vmem>>, %arg4: memref<1x32xf32, #tpu.memory_space<vmem>>, %arg5: memref<3x32x32xbf16, #tpu.memory_space<vmem>>, %arg6: memref<1x32xf32, #tpu.memory_space<vmem>>, %arg7: memref<3x32x32xbf16, #tpu.memory_space<vmem>>, %arg8: memref<1x32xf32, #tpu.memory_space<vmem>>, %arg9: memref<1x32xf32, #tpu.memory_space<vmem>>, %arg10: memref<1x1xf32, #tpu.memory_space<vmem>>, %arg11: memref<2x1x8xf32, #tpu.memory_space<vmem>>) attributes {dimension_semantics = [#tpu.dimension_semantics<parallel>], iteration_bounds = array<i64: 1>, scalar_prefetch = 0 : i64, scratch_operands = 0 : i64, tpu.core_type = #tpu.core_type<tc>, window_params = [{transform_indices = @transform_0, window_bounds = array<i64: 32, 32>}, {pipeline_mode = #tpu.pipeline_mode<synchronous>, transform_indices = @transform_1, window_bounds = array<i64: 1, 2, 32>}, {pipeline_mode = #tpu.pipeline_mode<synchronous>, transform_indices = @transform_2, window_bounds = array<i64: 1, 32>}, {pipeline_mode = #tpu.pipeline_mode<synchronous>, transform_indices = @transform_3, window_bounds = array<i64: 1, 32>}, {pipeline_mode = #tpu.pipeline_mode<synchronous>, transform_indices = @transform_4, window_bounds = array<i64: 3, 32, 32>}, {pipeline_mode = #tpu.pipeline_mode<synchronous>, transform_indices = @transform_5, window_bounds = array<i64: 1, 32>}, {pipeline_mode = #tpu.pipeline_mode<synchronous>, transform_indices = @transform_6, window_bounds = array<i64: 3, 32, 32>}, {pipeline_mode = #tpu.pipeline_mode<synchronous>, transform_indices = @transform_7, window_bounds = array<i64: 1, 32>}, {pipeline_mode = #tpu.pipeline_mode<synchronous>, transform_indices = @transform_8, window_bounds = array<i64: 1, 32>}, {pipeline_mode = #tpu.pipeline_mode<synchronous>, transform_indices = @transform_9, window_bounds = array<i64: 1, 1>}, {transform_indices = @transform_10, window_bounds = array<i64: 2, 1, 8>}]} {
    %c0 = arith.constant 0 : index
    %c0_0 = arith.constant 0 : index
    %0 = vector.load %arg1[%c0, %c0_0] : memref<32x32xbf16, #tpu.memory_space<vmem>>, vector<32x32xbf16>
    %1 = arith.extf %0 : vector<32x32xbf16> to vector<32x32xf32>
    %c0_1 = arith.constant 0 : index
    %c0_2 = arith.constant 0 : index
    %c0_3 = arith.constant 0 : index
    %2 = vector.load %arg2[%c0_1, %c0_2, %c0_3] : memref<1x2x32xf32, #tpu.memory_space<vmem>>, vector<1x2x32xf32>
    %cst = arith.constant dense<0.000000e+00> : vector<2x32xf32>
    %3 = vector.multi_reduction <add>, %2, %cst [0] : vector<1x2x32xf32> to vector<2x32xf32>
    %4 = vector.extract_strided_slice %3 {offsets = [0, 0], sizes = [1, 32], strides = [1, 1]} : vector<2x32xf32> to vector<1x32xf32>
    %cst_4 = arith.constant 3.125000e-02 : f32
    %5 = vector.broadcast %cst_4 : f32 to vector<1x32xf32>
    %6 = arith.mulf %4, %5 : vector<1x32xf32>
    %7 = vector.extract_strided_slice %3 {offsets = [1, 0], sizes = [1, 32], strides = [1, 1]} : vector<2x32xf32> to vector<1x32xf32>
    %cst_5 = arith.constant 3.125000e-02 : f32
    %8 = vector.broadcast %cst_5 : f32 to vector<1x32xf32>
    %9 = arith.mulf %7, %8 : vector<1x32xf32>
    %10 = arith.mulf %6, %6 : vector<1x32xf32>
    %11 = arith.subf %9, %10 : vector<1x32xf32>
    %cst_6 = arith.constant 0.000000e+00 : f32
    %12 = vector.broadcast %cst_6 : f32 to vector<1x32xf32>
    %13 = arith.maximumf %11, %12 : vector<1x32xf32>
    %c0_7 = arith.constant 0 : index
    %c0_8 = arith.constant 0 : index
    %14 = vector.load %arg3[%c0_7, %c0_8] : memref<1x32xf32, #tpu.memory_space<vmem>>, vector<1x32xf32>
    %cst_9 = arith.constant 9.99999974E-6 : f32
    %15 = vector.broadcast %cst_9 : f32 to vector<1x32xf32>
    %16 = arith.addf %13, %15 : vector<1x32xf32>
    %17 = math.rsqrt %16 : vector<1x32xf32>
    %18 = arith.mulf %14, %17 : vector<1x32xf32>
    %c0_10 = arith.constant 0 : index
    %c0_11 = arith.constant 0 : index
    %19 = vector.load %arg4[%c0_10, %c0_11] : memref<1x32xf32, #tpu.memory_space<vmem>>, vector<1x32xf32>
    %20 = arith.mulf %6, %18 : vector<1x32xf32>
    %21 = arith.subf %19, %20 : vector<1x32xf32>
    %22 = tpu.iota {dimensions = array<i32: 0>} : vector<32x1xi32>
    %c16_i32 = arith.constant 16 : i32
    %c0_i32 = arith.constant 0 : i32
    %23 = arith.cmpi eq, %c16_i32, %c0_i32 : i32
    %c1_i32 = arith.constant 1 : i32
    %24 = arith.select %23, %c1_i32, %c16_i32 : i32
    %25 = vector.broadcast %24 : i32 to vector<32x1xi32>
    %26 = arith.remsi %22, %25 : vector<32x1xi32>
    %c0_i32_12 = arith.constant 0 : i32
    %27 = vector.broadcast %c0_i32_12 : i32 to vector<32x1xi32>
    %28 = arith.cmpi ne, %26, %27 : vector<32x1xi32>
    %c0_i32_13 = arith.constant 0 : i32
    %29 = vector.broadcast %c0_i32_13 : i32 to vector<32x1xi32>
    %30 = arith.cmpi slt, %26, %29 : vector<32x1xi32>
    %c0_i32_14 = arith.constant 0 : i32
    %31 = arith.cmpi slt, %24, %c0_i32_14 : i32
    %32 = vector.broadcast %31 : i1 to vector<32x1xi1>
    %33 = vector.broadcast %32 : vector<32x1xi1> to vector<32x1xi1>
    %34 = arith.xori %30, %33 : vector<32x1xi1>
    %35 = arith.andi %34, %28 : vector<32x1xi1>
    %36 = vector.broadcast %24 : i32 to vector<32x1xi32>
    %37 = arith.addi %26, %36 : vector<32x1xi32>
    %38 = arith.select %35, %37, %26 : vector<32x1xi1>, vector<32x1xi32>
    %c0_i32_15 = arith.constant 0 : i32
    %39 = vector.broadcast %c0_i32_15 : i32 to vector<32x1xi32>
    %40 = arith.cmpi eq, %38, %39 : vector<32x1xi32>
    %c15_i32 = arith.constant 15 : i32
    %41 = vector.broadcast %c15_i32 : i32 to vector<32x1xi32>
    %42 = arith.cmpi eq, %38, %41 : vector<32x1xi32>
    %c0_16 = arith.constant 0 : index
    %c0_17 = arith.constant 0 : index
    %43 = vector.load %arg6[%c0_16, %c0_17] : memref<1x32xf32, #tpu.memory_space<vmem>>, vector<1x32xf32>
    %c0_18 = arith.constant 0 : index
    %c0_19 = arith.constant 0 : index
    %44 = vector.load %arg8[%c0_18, %c0_19] : memref<1x32xf32, #tpu.memory_space<vmem>>, vector<1x32xf32>
    %45 = vector.broadcast %18 : vector<1x32xf32> to vector<32x32xf32>
    %46 = arith.mulf %1, %45 : vector<32x32xf32>
    %47 = vector.broadcast %21 : vector<1x32xf32> to vector<32x32xf32>
    %48 = arith.addf %46, %47 : vector<32x32xf32>
    %49 = arith.truncf %48 : vector<32x32xf32> to vector<32x32xbf16>
    %c0_20 = arith.constant 0 : index
    %c0_21 = arith.constant 0 : index
    %c0_22 = arith.constant 0 : index
    %50 = vector.load %arg5[%c0_20, %c0_21, %c0_22] : memref<3x32x32xbf16, #tpu.memory_space<vmem>>, vector<1x32x32xbf16>
    %51 = vector.shape_cast %50 : vector<1x32x32xbf16> to vector<32x32xbf16>
    %cst_23 = arith.constant dense<0.000000e+00> : vector<32x32xf32>
    %52 = tpu.matmul %49, %51, %cst_23 {dimension_numbers = #tpu.dot_dimension_numbers<[1], [0], [0], [1], [0, 0, 1, 1], [], []>} : vector<32x32xbf16>, vector<32x32xbf16>, vector<32x32xf32> -> vector<32x32xf32>
    %c1 = arith.constant 1 : index
    %c0_24 = arith.constant 0 : index
    %c0_25 = arith.constant 0 : index
    %53 = vector.load %arg5[%c1, %c0_24, %c0_25] : memref<3x32x32xbf16, #tpu.memory_space<vmem>>, vector<1x32x32xbf16>
    %54 = vector.shape_cast %53 : vector<1x32x32xbf16> to vector<32x32xbf16>
    %cst_26 = arith.constant dense<0.000000e+00> : vector<32x32xf32>
    %55 = tpu.matmul %49, %54, %cst_26 {dimension_numbers = #tpu.dot_dimension_numbers<[1], [0], [0], [1], [0, 0, 1, 1], [], []>} : vector<32x32xbf16>, vector<32x32xbf16>, vector<32x32xf32> -> vector<32x32xf32>
    %c2 = arith.constant 2 : index
    %c0_27 = arith.constant 0 : index
    %c0_28 = arith.constant 0 : index
    %56 = vector.load %arg5[%c2, %c0_27, %c0_28] : memref<3x32x32xbf16, #tpu.memory_space<vmem>>, vector<1x32x32xbf16>
    %57 = vector.shape_cast %56 : vector<1x32x32xbf16> to vector<32x32xbf16>
    %cst_29 = arith.constant dense<0.000000e+00> : vector<32x32xf32>
    %58 = tpu.matmul %49, %57, %cst_29 {dimension_numbers = #tpu.dot_dimension_numbers<[1], [0], [0], [1], [0, 0, 1, 1], [], []>} : vector<32x32xbf16>, vector<32x32xbf16>, vector<32x32xf32> -> vector<32x32xf32>
    %59 = vector.broadcast %43 : vector<1x32xf32> to vector<32x32xf32>
    %60 = arith.addf %55, %59 : vector<32x32xf32>
    %c1_i32_30 = arith.constant 1 : i32
    %61 = tpu.dynamic_rotate %52 by %c1_i32_30 dim 0 : vector<32x32xf32>, i32 -> vector<32x32xf32>
    %cst_31 = arith.constant 0.000000e+00 : f32
    %62 = vector.shape_cast %40 : vector<32x1xi1> to vector<32x1xi1>
    %63 = vector.broadcast %62 : vector<32x1xi1> to vector<32x32xi1>
    %64 = vector.broadcast %cst_31 : f32 to vector<32x32xf32>
    %65 = arith.select %63, %64, %61 : vector<32x32xi1>, vector<32x32xf32>
    %66 = arith.addf %60, %65 : vector<32x32xf32>
    %c31_i32 = arith.constant 31 : i32
    %67 = tpu.dynamic_rotate %58 by %c31_i32 dim 0 : vector<32x32xf32>, i32 -> vector<32x32xf32>
    %cst_32 = arith.constant 0.000000e+00 : f32
    %68 = vector.shape_cast %42 : vector<32x1xi1> to vector<32x1xi1>
    %69 = vector.broadcast %68 : vector<32x1xi1> to vector<32x32xi1>
    %70 = vector.broadcast %cst_32 : f32 to vector<32x32xf32>
    %71 = arith.select %69, %70, %67 : vector<32x32xi1>, vector<32x32xf32>
    %72 = arith.addf %66, %71 : vector<32x32xf32>
    %73 = arith.truncf %72 : vector<32x32xf32> to vector<32x32xbf16>
    %c0_33 = arith.constant 0 : index
    %c0_34 = arith.constant 0 : index
    %c0_35 = arith.constant 0 : index
    %74 = vector.load %arg7[%c0_33, %c0_34, %c0_35] : memref<3x32x32xbf16, #tpu.memory_space<vmem>>, vector<1x32x32xbf16>
    %75 = vector.shape_cast %74 : vector<1x32x32xbf16> to vector<32x32xbf16>
    %cst_36 = arith.constant dense<0.000000e+00> : vector<32x32xf32>
    %76 = tpu.matmul %73, %75, %cst_36 {dimension_numbers = #tpu.dot_dimension_numbers<[1], [0], [0], [1], [0, 0, 1, 1], [], []>} : vector<32x32xbf16>, vector<32x32xbf16>, vector<32x32xf32> -> vector<32x32xf32>
    %c1_37 = arith.constant 1 : index
    %c0_38 = arith.constant 0 : index
    %c0_39 = arith.constant 0 : index
    %77 = vector.load %arg7[%c1_37, %c0_38, %c0_39] : memref<3x32x32xbf16, #tpu.memory_space<vmem>>, vector<1x32x32xbf16>
    %78 = vector.shape_cast %77 : vector<1x32x32xbf16> to vector<32x32xbf16>
    %cst_40 = arith.constant dense<0.000000e+00> : vector<32x32xf32>
    %79 = tpu.matmul %73, %78, %cst_40 {dimension_numbers = #tpu.dot_dimension_numbers<[1], [0], [0], [1], [0, 0, 1, 1], [], []>} : vector<32x32xbf16>, vector<32x32xbf16>, vector<32x32xf32> -> vector<32x32xf32>
    %c2_41 = arith.constant 2 : index
    %c0_42 = arith.constant 0 : index
    %c0_43 = arith.constant 0 : index
    %80 = vector.load %arg7[%c2_41, %c0_42, %c0_43] : memref<3x32x32xbf16, #tpu.memory_space<vmem>>, vector<1x32x32xbf16>
    %81 = vector.shape_cast %80 : vector<1x32x32xbf16> to vector<32x32xbf16>
    %cst_44 = arith.constant dense<0.000000e+00> : vector<32x32xf32>
    %82 = tpu.matmul %73, %81, %cst_44 {dimension_numbers = #tpu.dot_dimension_numbers<[1], [0], [0], [1], [0, 0, 1, 1], [], []>} : vector<32x32xbf16>, vector<32x32xbf16>, vector<32x32xf32> -> vector<32x32xf32>
    %83 = vector.broadcast %44 : vector<1x32xf32> to vector<32x32xf32>
    %84 = arith.addf %79, %83 : vector<32x32xf32>
    %c1_i32_45 = arith.constant 1 : i32
    %85 = tpu.dynamic_rotate %76 by %c1_i32_45 dim 0 : vector<32x32xf32>, i32 -> vector<32x32xf32>
    %cst_46 = arith.constant 0.000000e+00 : f32
    %86 = vector.shape_cast %40 : vector<32x1xi1> to vector<32x1xi1>
    %87 = vector.broadcast %86 : vector<32x1xi1> to vector<32x32xi1>
    %88 = vector.broadcast %cst_46 : f32 to vector<32x32xf32>
    %89 = arith.select %87, %88, %85 : vector<32x32xi1>, vector<32x32xf32>
    %90 = arith.addf %84, %89 : vector<32x32xf32>
    %c31_i32_47 = arith.constant 31 : i32
    %91 = tpu.dynamic_rotate %82 by %c31_i32_47 dim 0 : vector<32x32xf32>, i32 -> vector<32x32xf32>
    %cst_48 = arith.constant 0.000000e+00 : f32
    %92 = vector.shape_cast %42 : vector<32x1xi1> to vector<32x1xi1>
    %93 = vector.broadcast %92 : vector<32x1xi1> to vector<32x32xi1>
    %94 = vector.broadcast %cst_48 : f32 to vector<32x32xf32>
    %95 = arith.select %93, %94, %91 : vector<32x32xi1>, vector<32x32xf32>
    %96 = arith.addf %90, %95 : vector<32x32xf32>
    %cst_49 = arith.constant 0.000000e+00 : f32
    %97 = vector.broadcast %cst_49 : f32 to vector<32x32xf32>
    %98 = arith.cmpf oge, %96, %97 : vector<32x32xf32>
    %cst_50 = arith.constant 0.00999999977 : f32
    %99 = vector.broadcast %cst_50 : f32 to vector<32x32xf32>
    %100 = arith.mulf %99, %96 : vector<32x32xf32>
    %101 = arith.select %98, %96, %100 : vector<32x32xi1>, vector<32x32xf32>
    %102 = arith.addf %1, %101 : vector<32x32xf32>
    %103 = vector.shape_cast %102 : vector<32x32xf32> to vector<16x2x32xf32>
    %cst_51 = arith.constant dense<0.000000e+00> : vector<16x32xf32>
    %104 = vector.multi_reduction <add>, %103, %cst_51 [1] : vector<16x2x32xf32> to vector<16x32xf32>
    %cst_52 = arith.constant 5.000000e-01 : f32
    %105 = vector.broadcast %cst_52 : f32 to vector<16x32xf32>
    %106 = arith.mulf %104, %105 : vector<16x32xf32>
    %107 = vector.shape_cast %106 : vector<16x32xf32> to vector<2x8x32xf32>
    %c0_53 = arith.constant 0 : index
    %c0_54 = arith.constant 0 : index
    %108 = vector.load %arg9[%c0_53, %c0_54] : memref<1x32xf32, #tpu.memory_space<vmem>>, vector<1x32xf32>
    %c0_55 = arith.constant 0 : index
    %c0_56 = arith.constant 0 : index
    %109 = vector.load %arg10[%c0_55, %c0_56] : memref<1x1xf32, #tpu.memory_space<vmem>>, vector<1x1xf32>
    %110 = vector.extract_strided_slice %107 {offsets = [0, 0, 0], sizes = [1, 8, 32], strides = [1, 1, 1]} : vector<2x8x32xf32> to vector<1x8x32xf32>
    %111 = vector.shape_cast %110 : vector<1x8x32xf32> to vector<8x32xf32>
    %cst_57 = arith.constant dense<0.000000e+00> : vector<1x8xf32>
    %112 = tpu.matmul %108, %111, %cst_57 {dimension_numbers = #tpu.dot_dimension_numbers<[1], [1], [0], [0], [0, 0, 1, 0], [], []>} : vector<1x32xf32>, vector<8x32xf32>, vector<1x8xf32> -> vector<1x8xf32>
    %113 = vector.broadcast %109 : vector<1x1xf32> to vector<1x8xf32>
    %114 = arith.addf %112, %113 : vector<1x8xf32>
    %c0_58 = arith.constant 0 : index
    %c0_59 = arith.constant 0 : index
    %c0_60 = arith.constant 0 : index
    %115 = vector.load %arg11[%c0_58, %c0_59, %c0_60] : memref<2x1x8xf32, #tpu.memory_space<vmem>>, vector<1x1x8xf32>
    %116 = vector.shape_cast %115 : vector<1x1x8xf32> to vector<1x8xf32>
    %117 = vector.shape_cast %114 : vector<1x8xf32> to vector<1x1x8xf32>
    tpu.vector_store %arg11[%c0_58, %c0_59, %c0_60], %117 {strides = array<i32>} : memref<2x1x8xf32, #tpu.memory_space<vmem>>, vector<1x1x8xf32>,
    %118 = vector.extract_strided_slice %107 {offsets = [1, 0, 0], sizes = [1, 8, 32], strides = [1, 1, 1]} : vector<2x8x32xf32> to vector<1x8x32xf32>
    %119 = vector.shape_cast %118 : vector<1x8x32xf32> to vector<8x32xf32>
    %cst_61 = arith.constant dense<0.000000e+00> : vector<1x8xf32>
    %120 = tpu.matmul %108, %119, %cst_61 {dimension_numbers = #tpu.dot_dimension_numbers<[1], [1], [0], [0], [0, 0, 1, 0], [], []>} : vector<1x32xf32>, vector<8x32xf32>, vector<1x8xf32> -> vector<1x8xf32>
    %121 = vector.broadcast %109 : vector<1x1xf32> to vector<1x8xf32>
    %122 = arith.addf %120, %121 : vector<1x8xf32>
    %c1_62 = arith.constant 1 : index
    %c0_63 = arith.constant 0 : index
    %c0_64 = arith.constant 0 : index
    %123 = vector.load %arg11[%c1_62, %c0_63, %c0_64] : memref<2x1x8xf32, #tpu.memory_space<vmem>>, vector<1x1x8xf32>
    %124 = vector.shape_cast %123 : vector<1x1x8xf32> to vector<1x8xf32>
    %125 = vector.shape_cast %122 : vector<1x8xf32> to vector<1x1x8xf32>
    tpu.vector_store %arg11[%c1_62, %c0_63, %c0_64], %125 {strides = array<i32>} : memref<2x1x8xf32, #tpu.memory_space<vmem>>, vector<1x1x8xf32>,
    return
  }
  func.func @transform_0(%arg0: i32) -> (i32, i32) {
    %c0_i32 = arith.constant 0 : i32
    %c0_i32_0 = arith.constant 0 : i32
    return %arg0, %c0_i32 : i32, i32
  }
  func.func @transform_1(%arg0: i32) -> (i32, i32, i32) {
    %c0_i32 = arith.constant 0 : i32
    %c0_i32_0 = arith.constant 0 : i32
    %c0_i32_1 = arith.constant 0 : i32
    %c0_i32_2 = arith.constant 0 : i32
    return %c0_i32, %c0_i32_0, %c0_i32_1 : i32, i32, i32
  }
  func.func @transform_2(%arg0: i32) -> (i32, i32) {
    %c0_i32 = arith.constant 0 : i32
    %c0_i32_0 = arith.constant 0 : i32
    %c0_i32_1 = arith.constant 0 : i32
    return %c0_i32, %c0_i32_0 : i32, i32
  }
  func.func @transform_3(%arg0: i32) -> (i32, i32) {
    %c0_i32 = arith.constant 0 : i32
    %c0_i32_0 = arith.constant 0 : i32
    %c0_i32_1 = arith.constant 0 : i32
    return %c0_i32, %c0_i32_0 : i32, i32
  }
  func.func @transform_4(%arg0: i32) -> (i32, i32, i32) {
    %c0_i32 = arith.constant 0 : i32
    %c0_i32_0 = arith.constant 0 : i32
    %c0_i32_1 = arith.constant 0 : i32
    %c0_i32_2 = arith.constant 0 : i32
    return %c0_i32, %c0_i32_0, %c0_i32_1 : i32, i32, i32
  }
  func.func @transform_5(%arg0: i32) -> (i32, i32) {
    %c0_i32 = arith.constant 0 : i32
    %c0_i32_0 = arith.constant 0 : i32
    %c0_i32_1 = arith.constant 0 : i32
    return %c0_i32, %c0_i32_0 : i32, i32
  }
  func.func @transform_6(%arg0: i32) -> (i32, i32, i32) {
    %c0_i32 = arith.constant 0 : i32
    %c0_i32_0 = arith.constant 0 : i32
    %c0_i32_1 = arith.constant 0 : i32
    %c0_i32_2 = arith.constant 0 : i32
    return %c0_i32, %c0_i32_0, %c0_i32_1 : i32, i32, i32
  }
  func.func @transform_7(%arg0: i32) -> (i32, i32) {
    %c0_i32 = arith.constant 0 : i32
    %c0_i32_0 = arith.constant 0 : i32
    %c0_i32_1 = arith.constant 0 : i32
    return %c0_i32, %c0_i32_0 : i32, i32
  }
  func.func @transform_8(%arg0: i32) -> (i32, i32) {
    %c0_i32 = arith.constant 0 : i32
    %c0_i32_0 = arith.constant 0 : i32
    %c0_i32_1 = arith.constant 0 : i32
    return %c0_i32, %c0_i32_0 : i32, i32
  }
  func.func @transform_9(%arg0: i32) -> (i32, i32) {
    %c0_i32 = arith.constant 0 : i32
    %c0_i32_0 = arith.constant 0 : i32
    %c0_i32_1 = arith.constant 0 : i32
    return %c0_i32, %c0_i32_0 : i32, i32
  }
  func.func @transform_10(%arg0: i32) -> (i32, i32, i32) {
    %c0_i32 = arith.constant 0 : i32
    %c0_i32_0 = arith.constant 0 : i32
    %c0_i32_1 = arith.constant 0 : i32
    return %arg0, %c0_i32, %c0_i32_0 : i32, i32, i32
  }
}

</mosaic_0001>

<bundles_post_ra>
// kernel: mfl_net_pallas.4
= control target key start
LH: loop header
LB: loop body
LE: loop exit
PB: predicated region body
PF: predicated region fallthrough
CT: control target
= control target key end

     0   :  { %vm43_vm0 = vcmask 1041408   ;;  %vm36_vm1 = vcmask 31744   ;;  %vm70_vm2 = vcmask 257024   ;;  %vm75_vm3 = vcmask 261120   ;;  %s196_s1 = inlined_call_operand.vmem [shape: bf16[4,32], index: 1, kind: input, shape index: {}]   ;;  %s197_s0 = inlined_call_operand.vmem [shape: bf16[32,4], index: 0, kind: input, shape index: {}]   ;;  %s198_s2 = inlined_call_operand.vmem [shape: f32[1,32], index: 2, kind: input, shape index: {}]   ;;  %s199_s3 = inlined_call_operand.vmem [shape: bf16[32,32], index: 3, kind: output, shape index: {0}]   ;;  %s200_s4 = inlined_call_operand.vmem [shape: f32[1,2,32], index: 4, kind: output, shape index: {1}]  }
   0x1   :  { %v21_v0 = vld [vmem:[%s196_s1] sm:$0x3]  ;;  %v129_v3 = vld [vmem:[%s197_s0 + $0x8] sm:$0xff]  ;;  %vm106_vm4 = vcmask 1040384   ;;  %vm108_vm5 = vcmask 254976  }
   0x2   :  { %v45_v1 = vsel %vm43_vm0, %v21_v0, 0  ;;  %v128_v2 = vld [vmem:[%s197_s0] sm:$0xff] }
   0x3   :  { %54 = vmatpush.bf16.msra.mxu0 %v45_v1  ;;  %130 = vmatpush.bf16.msra.mxu1 %v45_v1  ;;  %v131_v4 = vld [vmem:[%s198_s2] ss:$0 sm:$0xff] }
   0x6   :  { %126 = vmatmul.msk.bf16.vlgmr.msra.gmra.mxu0 %vm36_vm1, %v128_v2  ;;  %127 = vmatmul.msk.bf16.vlgmr.msra.gmra.mxu1 %vm36_vm1, %v129_v3 }
  0x83   :  { %v56_v5 = vpop.f32.mrf.mxu0  ;;  %v61_v6 = vpop.f32.mrf.mxu1 }
  0x84   :  { %v57_v7 = vadd.f32 %v131_v4, %v56_v5  ;;  %v62_v8 = vadd.f32 %v131_v4, %v61_v6 }
  0x86   :  { %v66_v9 = vpack.c.bf16 %v57_v7, %v57_v7  ;;  %v68_v10 = vpack.c.bf16 %v62_v8, %v62_v8  ;;  %v89_v13 = vmul.f32 %v57_v7, %v57_v7  ;;  %v76_v16 = vsel %vm75_vm3, %v57_v7, 0.0 }
  0x87   :  { %v91_v17 = vmul.f32 %v62_v8, %v62_v8  ;;  %v79_v24 = vsel %vm75_vm3, %v62_v8, 0.0 }
  0x88   :  { %71 = vst.msk [vmem:[%s199_s3] sm:$0xf] %vm70_vm2, %v66_v9  ;;  %v93_v23 = vsel %vm75_vm3, %v89_v13, 0.0 }
  0x89   :  { %73 = vst.msk [vmem:[%s199_s3 + $0x8] sm:$0xf] %vm70_vm2, %v68_v10  ;;  %v96_v29 = vsel %vm75_vm3, %v91_v17, 0.0 }
  0x8b   :  { %v58_v11 = vpop.f32.mrf.mxu0  ;;  %v63_v12 = vpop.f32.mrf.mxu1 }
  0x8c   :  { %v59_v14 = vadd.f32 %v131_v4, %v58_v11  ;;  %v64_v15 = vadd.f32 %v131_v4, %v63_v12 }
  0x8e   :  { %v67_v18 = vpack.c.bf16 %v59_v14, %v59_v14  ;;  %v77_v19 = vsel %vm75_vm3, %v59_v14, 0.0  ;;  %v90_v20 = vmul.f32 %v59_v14, %v59_v14  ;;  %v69_v21 = vpack.c.bf16 %v64_v15, %v64_v15 }
  0x8f   :  { %v78_v22 = vadd.f32 %v77_v19, %v76_v16  ;;  %v92_v26 = vmul.f32 %v64_v15, %v64_v15  ;;  %v81_v30 = vsel %vm75_vm3, %v64_v15, 0.0 }
  0x90   :  { %72 = vst.msk [vmem:[%s199_s3 + $0x4] sm:$0xf] %vm70_vm2, %v67_v18  ;;  %v94_v25 = vsel %vm75_vm3, %v90_v20, 0.0 }
  0x91   :  { %v95_v27 = vadd.f32 %v94_v25, %v93_v23  ;;  %74 = vst.msk [vmem:[%s199_s3 + $0xc] sm:$0xf] %vm70_vm2, %v69_v21  ;;  %v80_v28 = vadd.f32 %v79_v24, %v78_v22  ;;  %v98_v33 = vsel %vm75_vm3, %v92_v26, 0.0 }
  0x93   :  { %v82_v31 = vadd.f32 %v81_v30, %v80_v28  ;;  %v97_v32 = vadd.f32 %v96_v29, %v95_v27 }
  0x95   :  { %v83_v34 = vrot.slane %v82_v31, 4  ;;  %v99_v35 = vadd.f32 %v98_v33, %v97_v32 }
  0x97   :  { %v84_v36 = vadd.f32 %v83_v34, %v82_v31  ;;  %v100_v37 = vrot.slane %v99_v35, 4 }
  0x99   :  { %v85_v38 = vrot.slane %v84_v36, 2  ;;  %v101_v39 = vadd.f32 %v100_v37, %v99_v35 }
  0x9b   :  { %v86_v40 = vadd.f32 %v85_v38, %v84_v36  ;;  %v102_v41 = vrot.slane %v101_v39, 2 }
  0x9d   :  { %v87_v42 = vrot.slane %v86_v40, 1  ;;  %v103_v43 = vadd.f32 %v102_v41, %v101_v39 }
  0x9f   :  { %v104_v44 = vrot.slane %v103_v43, 1  ;;  %v88_v45 = vadd.f32 %v87_v42, %v86_v40 }
  0xa1   :  { %v105_v46 = vadd.f32 %v104_v44, %v103_v43 }
  0xa3   :  { %v107_v47 = vsel %vm106_vm4, %v88_v45, %v105_v46 }
  0xa4   :  { %109 = vst.msk [vmem:[%s200_s4] sm:$0x3] %vm108_vm5, %v107_v47 }

// kernel: mfl_net_pallas.5
= control target key start
LH: loop header
LB: loop body
LE: loop exit
PB: predicated region body
PF: predicated region fallthrough
CT: control target
= control target key end

     0   :  { %vm165_vm3 = vcmask 261120   ;;  %v70_v53 = vlaneseq  ;;  %vm486_vm11 = vcmask 257024   ;;  %vm521_vm15 = vcmask 1040384   ;;  %s880_s4 = inlined_call_operand.vmem [shape: bf16[3,32,32], index: 4, kind: input, shape index: {}]   ;;  %s881_s1 = inlined_call_operand.vmem [shape: f32[1,2,32], index: 1, kind: input, shape index: {}]   ;;  %s882_s0 = inlined_call_operand.vmem [shape: bf16[32,32], index: 0, kind: input, shape index: {}]   ;;  %s883_s2 = inlined_call_operand.vmem [shape: f32[1,32], index: 2, kind: input, shape index: {}]   ;;  %s884_s3 = inlined_call_operand.vmem [shape: f32[1,32], index: 3, kind: input, shape index: {}]   ;;  %s885_s5 = inlined_call_operand.vmem [shape: f32[1,32], index: 5, kind: input, shape index: {}]   ;;  %s886_s6 = inlined_call_operand.vmem [shape: bf16[3,32,32], index: 6, kind: input, shape index: {}]   ;;  %s887_s7 = inlined_call_operand.vmem [shape: f32[1,32], index: 7, kind: input, shape index: {}]   ;;  %s888_s8 = inlined_call_operand.vmem [shape: bf16[32,32], index: 8, kind: output, shape index: {0}]   ;;  %s889_s9 = inlined_call_operand.vmem [shape: f32[1,2,32], index: 9, kind: output, shape index: {1}]  }
   0x1   :  { %v610_v0 = vld [vmem:[%s880_s4 + $0x8] sm:$0xff]  ;;  %v40_v1 = vld [vmem:[%s881_s1] sm:$0x3]  ;;  %v612_v11 = vld [vmem:[%s880_s4 + $0x18] sm:$0xff] }
   0x2   :  { %178 = vmatpush.bf16.msra.mxu0 %v610_v0  ;;  %630 = vmatpush.bf16.msra.mxu2 %v610_v0  ;;  %v609_v2 = vld [vmem:[%s880_s4] sm:$0xff]  ;;  %v42_v3 = vmul.f32 0.03125, %v40_v1  ;;  %v614_v9 = vld [vmem:[%s880_s4 + $0x28] sm:$0xff]  ;;  %v611_v14 = vld [vmem:[%s880_s4 + $0x10] sm:$0xff]  ;;  %v761_v55 = vshrl.u32 %v70_v53, 7 }
   0x3   :  { %632 = vmatpush.bf16.msra.mxu3 %v614_v9  ;;  %v613_v13 = vld [vmem:[%s880_s4 + $0x20] sm:$0xff]  ;;  %219 = vmatpush.bf16.msra.mxu1 %v614_v9  ;;  %v720_v22 = vld [vmem:[%s882_s0 + $0x8] sm:$0xff]   ;;  %v618_v46 = vld [vmem:[%s886_s6 + $0x18] sm:$0xff] }
   0x4   :  { %v43_v4 = vmul.f32 %v42_v3, %v42_v3  ;;  %v712_v20 = vld [vmem:[%s882_s0] sm:$0xff]   ;;  %v627_v27 = vunpack.c.l.bf16 %v720_v22  ;;  %v628_v29 = vunpack.c.h.bf16 %v720_v22  ;;  %v616_v44 = vld [vmem:[%s886_s6 + $0x8] sm:$0xff]  ;;  %v617_v49 = vld [vmem:[%s886_s6 + $0x10] sm:$0xff]  ;;  %v79_v56 = vand.u32 15, %v761_v55 }
   0x5   :  { %v49_v21 = vld [vmem:[%s883_s2] sm:$0x1]  ;;  %v623_v24 = vunpack.c.l.bf16 %v712_v20  ;;  %v624_v25 = vunpack.c.h.bf16 %v712_v20  ;;  %v620_v45 = vld [vmem:[%s886_s6 + $0x28] sm:$0xff]  ;;  %v72_v58 = vadd.s32 8, %v761_v55  ;;  %vm270_vm5 = vcmp.lt.s32.totalorder %v761_v55, 1 }
   0x6   :  { %179 = vmatpush.bf16.msra.mxu0 %v609_v2  ;;  %631 = vmatpush.bf16.msra.mxu2 %v609_v2  ;;  %v45_v5 = vrot.slane %v43_v4, 7  ;;  %v67_v28 = vld [vmem:[%s884_s3] sm:$0x1]  ;;  %vm768_vm4 = vcmp.eq.s32.totalorder %v79_v56, 0  ;;  %vm295_vm6 = vcmp.lt.s32.totalorder %v761_v55, 7 }
   0x7   :  { %633 = vmatpush.bf16.msra.mxu3 %v613_v13  ;;  %220 = vmatpush.bf16.msra.mxu1 %v613_v13  ;;  %v615_v47 = vld [vmem:[%s886_s6] sm:$0xff]  ;;  %v86_v1 = vand.u32 15, %v72_v58 }
   0x8   :  { %v47_v6 = vsub.f32 %v42_v3, %v45_v5  ;;  %v619_v48 = vld [vmem:[%s886_s6 + $0x20] sm:$0xff] }
   0x9   :  { %v634_v61 = vld [vmem:[%s885_s5] ss:$0 sm:$0xff]  ;;  %vm780_vm7 = vcmp.eq.s32.totalorder %v86_v1, 15 }
   0xa   :  { %v48_v7 = vmax.f32 %v47_v6, 0.0  ;;  %253 = vmatpush.bf16.msrb.mxu2 %v612_v11  ;;  %387 = vmatpush.bf16.msrb.mxu0 %v620_v45  ;;  %v635_v58 = vld [vmem:[%s887_s7] ss:$0 sm:$0xff] }
   0xb   :  { %346 = vmatpush.bf16.msrb.mxu3 %v616_v44  ;;  %421 = vmatpush.bf16.msrb.mxu1 %v618_v46 }
   0xc   :  { %v50_v8 = vadd.f32 1e-05, %v48_v7 }
   0xe   :  { %636 = vrsqrt.f32 %v50_v8  ;;  %vm57_vm0 = vweird.f32 %v50_v8  ;;  %254 = vmatpush.bf16.msrb.mxu2 %v611_v14  ;;  %388 = vmatpush.bf16.msrb.mxu0 %v619_v48 }
   0xf   :  { %347 = vmatpush.bf16.msrb.mxu3 %v615_v47  ;;  %422 = vmatpush.bf16.msrb.mxu1 %v617_v49 }
  0x14   :  { %v637_v10 = vpop.eup %636 }
  0x15   :  { %v52_v12 = vmul.f32 %v637_v10, %v50_v8  ;;  %vm58_vm1 = vweird.f32 %v637_v10 }
  0x16   :  { %vm59_vm2 = vmor %vm57_vm0, %vm58_vm1  ;;  %vm523_vm0 = vcmask 254976  }
  0x17   :  { %v53_v15 = vmul.f32 %v637_v10, %v52_v12 }
  0x19   :  { %v54_v16 = vmul.f32 0.5, %v53_v15 }
  0x1b   :  { %v55_v17 = vsub.f32 1.5, %v54_v16 }
  0x1d   :  { %v56_v18 = vmul.f32 %v637_v10, %v55_v17 }
  0x1f   :  { %v60_v19 = vsel %vm59_vm2, %v637_v10, %v56_v18 }
  0x20   :  { %62 = vst [vmem:[#allocation1] sm:$0xff] %v60_v19  ;;  %v73_v19 = vadd.s32 16, %v761_v55 }
  0x27   :  { %v64_v23 = vld [vmem:[#allocation1 + $0x1] ss:$9 sm:$0xff] }
  0x28   :  { %v66_v26 = vmul.f32 %v64_v23, %v49_v21 }
  0x2a   :  { %v68_v30 = vmul.f32 %v66_v26, %v42_v3  ;;  %v134_v31 = vperm.slane %v66_v26, 0 }
  0x2c   :  { %v69_v32 = vsub.f32 %v67_v28, %v68_v30  ;;  %v136_v33 = vmul.f32 %v623_v24, %v134_v31  ;;  %v137_v34 = vmul.f32 %v624_v25, %v134_v31  ;;  %v138_v35 = vmul.f32 %v627_v27, %v134_v31 }
  0x2d   :  { %v139_v36 = vmul.f32 %v628_v29, %v134_v31  ;;  %v93_v28 = vand.u32 15, %v73_v19  ;;  %v74_v31 = vadd.s32 24, %v761_v55 }
  0x2e   :  { %v141_v37 = vperm.slane %v69_v32, 0 }
  0x2f   :  { %vm795_vm8 = vcmp.eq.s32.totalorder %v93_v28, 0 }
  0x30   :  { %v143_v38 = vadd.f32 %v141_v37, %v136_v33  ;;  %v144_v39 = vadd.f32 %v141_v37, %v137_v34  ;;  %v145_v40 = vadd.f32 %v141_v37, %v138_v35  ;;  %v146_v41 = vadd.f32 %v141_v37, %v139_v36 }
  0x32   :  { %v147_v42 = vpack.c.bf16 %v144_v39, %v143_v38  ;;  %v148_v43 = vpack.c.bf16 %v146_v41, %v145_v40  ;;  %v100_v38 = vand.u32 15, %v74_v31 }
  0x34   :  { %541 = vmatmul.msk.bf16.vlgmr.msra.gmra.mxu0 %vm165_vm3, %v147_v42  ;;  %542 = vmatmul.msk.bf16.vlgmr.msra.gmra.mxu2 %vm165_vm3, %v148_v43  ;;  %vm805_vm9 = vcmp.eq.s32.totalorder %v100_v38, 15 }
  0x35   :  { %560 = vmatmul.msk.bf16.vlgmr.msra.gmra.mxu3 %vm165_vm3, %v148_v43  ;;  %559 = vmatmul.msk.bf16.vlgmr.msra.gmra.mxu1 %vm165_vm3, %v147_v42 }
  0x44   :  { %569 = vmatmul.msk.bf16.vlgmr.msrb.gmra.mxu2 %vm165_vm3, %v147_v42 }
  0x54   :  { %570 = vmatmul.msk.bf16.gmra.mxu2 %vm165_vm3, %v148_v43 }
  0xb1   :  { %v181_v54 = vpop.f32.mrf.mxu0 }
  0xb2   :  { %v222_v52 = vpop.f32.mrf.mxu1  ;;  %v266_v59 = vrot.slane %v181_v54, 7 }
  0xb3   :  { %v291_v7 = vrot.slane %v222_v52, 1 }
  0xb7   :  { %v186_v50 = vpop.f32.mrf.mxu2 }
  0xb8   :  { %v227_v63 = vpop.f32.mrf.mxu3  ;;  %v268_v33 = vrot.slane %v186_v50, 7 }
  0xb9   :  { %v183_v2 = vpop.f32.mrf.mxu0  ;;  %v293_v3 = vrot.slane %v227_v63, 1 }
  0xba   :  { %v224_v62 = vpop.f32.mrf.mxu1  ;;  %v267_v8 = vrot.slane %v183_v2, 7 }
  0xbb   :  { %v292_v4 = vrot.slane %v224_v62, 1 }
  0xbc   :  { %v273_v16 = vsel %vm270_vm5, %v266_v59, %v267_v8  ;;  %v272_v37 = vsel %vm270_vm5, %v267_v8, %v268_v33 }
  0xbd   :  { %v297_v11 = vsel %vm295_vm6, %v292_v4, %v293_v3  ;;  %v298_v15 = vsel %vm295_vm6, %v291_v7, %v292_v4  ;;  %v285_v39 = vsel %vm795_vm8, 0.0, %v272_v37 }
  0xbe   :  { %v309_v18 = vsel %vm780_vm7, 0.0, %v297_v11 }
  0xbf   :  { %v188_v51 = vpop.f32.mrf.mxu2 }
  0xc0   :  { %v269_v60 = vrot.slane %v188_v51, 7  ;;  %v229_v32 = vpop.f32.mrf.mxu3 }
  0xc1   :  { %v294_v35 = vrot.slane %v229_v32, 1 }
  0xc2   :  { %v274_v6 = vsel %vm270_vm5, %v269_v60, %v266_v59  ;;  %v271_v45 = vsel %vm270_vm5, %v268_v33, %v269_v60 }
  0xc3   :  { %v283_v9 = vsel %vm768_vm4, 0.0, %v274_v6  ;;  %v299_v41 = vsel %vm295_vm6, %v294_v35, %v291_v7  ;;  %v296_v47 = vsel %vm295_vm6, %v293_v3, %v294_v35 }
  0xc4   :  { %v311_v48 = vsel %vm805_vm9, 0.0, %v299_v41 }
  0xc7   :  { %v256_v57 = vpop.f32.mrf.mxu2 }
  0xc8   :  { %v257_v5 = vadd.f32 %v634_v61, %v256_v57 }
  0xca   :  { %v287_v12 = vadd.f32 %v283_v9, %v257_v5 }
  0xcc   :  { %v312_v21 = vadd.f32 %v298_v15, %v287_v12 }
  0xcf   :  { %v258_v10 = vpop.f32.mrf.mxu2 }
  0xd0   :  { %v259_v14 = vadd.f32 %v634_v61, %v258_v10 }
  0xd2   :  { %v288_v17 = vadd.f32 %v273_v16, %v259_v14 }
  0xd4   :  { %v313_v23 = vadd.f32 %v309_v18, %v288_v17 }
  0xd6   :  { %v316_v26 = vpack.c.bf16 %v313_v23, %v312_v21 }
  0xd7   :  { %v261_v30 = vpop.f32.mrf.mxu2 }
  0xd8   :  { %579 = vmatmul.msk.bf16.vlgmr.msrb.gmra.mxu3 %vm165_vm3, %v316_v26  ;;  %597 = vmatmul.msk.bf16.vlgmr.msrb.gmra.mxu0 %vm165_vm3, %v316_v26  ;;  %v262_v36 = vadd.f32 %v634_v61, %v261_v30 }
  0xd9   :  { %607 = vmatmul.msk.bf16.vlgmr.msrb.gmra.mxu1 %vm165_vm3, %v316_v26 }
  0xda   :  { %v289_v42 = vadd.f32 %v285_v39, %v262_v36 }
  0xdc   :  { %v314_v49 = vadd.f32 %v296_v47, %v289_v42 }
  0xdf   :  { %v263_v40 = vpop.f32.mrf.mxu2 }
  0xe0   :  { %v264_v44 = vadd.f32 %v634_v61, %v263_v40 }
  0xe2   :  { %v290_v46 = vadd.f32 %v271_v45, %v264_v44 }
  0xe4   :  { %v315_v50 = vadd.f32 %v311_v48, %v290_v46 }
  0xe6   :  { %v317_v51 = vpack.c.bf16 %v315_v50, %v314_v49 }
  0xe8   :  { %580 = vmatmul.msk.bf16.gmra.mxu3 %vm165_vm3, %v317_v51  ;;  %598 = vmatmul.msk.bf16.gmra.mxu0 %vm165_vm3, %v317_v51 }
  0xe9   :  { %608 = vmatmul.msk.bf16.gmra.mxu1 %vm165_vm3, %v317_v51 }
 0x155   :  { %v390_v52 = vpop.f32.mrf.mxu0 }
 0x156   :  { %v424_v53 = vpop.f32.mrf.mxu1  ;;  %v450_v30 = vrot.slane %v390_v52, 1 }
 0x157   :  { %v425_v35 = vadd.f32 %v635_v58, %v424_v53 }
 0x15b   :  { %v349_v54 = vpop.f32.mrf.mxu3 }
 0x15c   :  { %v434_v60 = vrot.slane %v349_v54, 7 }
 0x15d   :  { %v392_v56 = vpop.f32.mrf.mxu0 }
 0x15e   :  { %v426_v57 = vpop.f32.mrf.mxu1  ;;  %v451_v1 = vrot.slane %v392_v56, 1 }
 0x15f   :  { %v427_v62 = vadd.f32 %v635_v58, %v426_v57 }
 0x160   :  { %v456_v45 = vsel %vm295_vm6, %v450_v30, %v451_v1 }
 0x163   :  { %v351_v59 = vpop.f32.mrf.mxu3 }
 0x164   :  { %v435_v61 = vrot.slane %v351_v59, 7 }
 0x165   :  { %v395_v63 = vpop.f32.mrf.mxu0 }
 0x166   :  { %v440_v2 = vsel %vm270_vm5, %v434_v60, %v435_v61  ;;  %v452_v3 = vrot.slane %v395_v63, 1  ;;  %v429_v6 = vpop.f32.mrf.mxu1 }
 0x167   :  { %v447_v4 = vadd.f32 %v440_v2, %v427_v62  ;;  %v430_v15 = vadd.f32 %v635_v58, %v429_v6 }
 0x168   :  { %v455_v5 = vsel %vm295_vm6, %v451_v1, %v452_v3 }
 0x169   :  { %v459_v7 = vsel %vm780_vm7, 0.0, %v455_v5 }
 0x16a   :  { %v463_v8 = vadd.f32 %v459_v7, %v447_v4 }
 0x16b   :  { %v354_v9 = vpop.f32.mrf.mxu3 }
 0x16c   :  { %vm467_vm10 = vcmp.ge.f32.partialorder %v463_v8, 0.0  ;;  %v471_v10 = vmul.f32 0.01, %v463_v8  ;;  %v436_v11 = vrot.slane %v354_v9, 7 }
 0x16d   :  { %v397_v12 = vpop.f32.mrf.mxu0 }
 0x16e   :  { %v475_v14 = vsel %vm467_vm10, %v463_v8, %v471_v10  ;;  %v439_v16 = vsel %vm270_vm5, %v435_v61, %v436_v11  ;;  %v453_v17 = vrot.slane %v397_v12, 1  ;;  %v431_v28 = vpop.f32.mrf.mxu1 }
 0x16f   :  { %v479_v18 = vadd.f32 %v624_v25, %v475_v14  ;;  %v444_v19 = vsel %vm795_vm8, 0.0, %v439_v16  ;;  %v432_v34 = vadd.f32 %v635_v58, %v431_v28 }
 0x170   :  { %v448_v13 = vadd.f32 %v444_v19, %v430_v15  ;;  %v454_v21 = vsel %vm295_vm6, %v452_v3, %v453_v17  ;;  %v457_v33 = vsel %vm295_vm6, %v453_v17, %v450_v30 }
 0x171   :  { %v483_v23 = vpack.c.bf16 %v479_v18, %v479_v18  ;;  %v461_v42 = vsel %vm805_vm9, 0.0, %v457_v33  ;;  %v505_v51 = vmul.f32 %v479_v18, %v479_v18  ;;  %v492_v52 = vsel %vm165_vm3, %v479_v18, 0.0 }
 0x172   :  { %v464_v26 = vadd.f32 %v454_v21, %v448_v13 }
 0x173   :  { %488 = vst.msk [vmem:[%s888_s8 + $0x4] sm:$0xf] %vm486_vm11, %v483_v23  ;;  %v356_v31 = vpop.f32.mrf.mxu3  ;;  %v509_v22 = vsel %vm165_vm3, %v505_v51, 0.0 }
 0x174   :  { %vm468_vm12 = vcmp.ge.f32.partialorder %v464_v26, 0.0  ;;  %v472_v25 = vmul.f32 0.01, %v464_v26  ;;  %v437_v32 = vrot.slane %v356_v31, 7 }
 0x176   :  { %v476_v36 = vsel %vm468_vm12, %v464_v26, %v472_v25  ;;  %v438_v37 = vsel %vm270_vm5, %v436_v11, %v437_v32  ;;  %v441_v38 = vsel %vm270_vm5, %v437_v32, %v434_v60 }
 0x177   :  { %v480_v39 = vadd.f32 %v627_v27, %v476_v36  ;;  %v442_v40 = vsel %vm768_vm4, 0.0, %v441_v38  ;;  %v449_v41 = vadd.f32 %v438_v37, %v432_v34 }
 0x178   :  { %v446_v44 = vadd.f32 %v442_v40, %v425_v35 }
 0x179   :  { %v484_v46 = vpack.c.bf16 %v480_v39, %v480_v39  ;;  %v465_v47 = vadd.f32 %v461_v42, %v449_v41  ;;  %v506_v54 = vmul.f32 %v480_v39, %v480_v39 }
 0x17a   :  { %v462_v48 = vadd.f32 %v456_v45, %v446_v44 }
 0x17b   :  { %489 = vst.msk [vmem:[%s888_s8 + $0x8] sm:$0xf] %vm486_vm11, %v484_v46  ;;  %vm469_vm13 = vcmp.ge.f32.partialorder %v465_v47, 0.0  ;;  %v473_v27 = vmul.f32 0.01, %v465_v47  ;;  %v511_v62 = vsel %vm165_vm3, %v506_v54, 0.0 }
 0x17c   :  { %vm466_vm14 = vcmp.ge.f32.partialorder %v462_v48, 0.0  ;;  %v470_v0 = vmul.f32 0.01, %v462_v48 }
 0x17d   :  { %v477_v49 = vsel %vm469_vm13, %v465_v47, %v473_v27 }
 0x17e   :  { %v474_v50 = vsel %vm466_vm14, %v462_v48, %v470_v0  ;;  %v481_v43 = vadd.f32 %v628_v29, %v477_v49  ;;  %v494_v29 = vsel %vm165_vm3, %v480_v39, 0.0 }
 0x17f   :  { %v478_v55 = vadd.f32 %v623_v24, %v474_v50 }
 0x180   :  { %v485_v53 = vpack.c.bf16 %v481_v43, %v481_v43  ;;  %v507_v20 = vmul.f32 %v481_v43, %v481_v43  ;;  %v496_v63 = vsel %vm165_vm3, %v481_v43, 0.0 }
 0x181   :  { %v482_v56 = vpack.c.bf16 %v478_v55, %v478_v55  ;;  %v491_v57 = vsel %vm165_vm3, %v478_v55, 0.0  ;;  %v504_v58 = vmul.f32 %v478_v55, %v478_v55 }
 0x182   :  { %490 = vst.msk [vmem:[%s888_s8 + $0xc] sm:$0xf] %vm486_vm11, %v485_v53  ;;  %v493_v59 = vadd.f32 %v492_v52, %v491_v57  ;;  %v513_v3 = vsel %vm165_vm3, %v507_v20, 0.0 }
 0x183   :  { %487 = vst.msk [vmem:[%s888_s8] sm:$0xf] %vm486_vm11, %v482_v56  ;;  %v508_v24 = vsel %vm165_vm3, %v504_v58, 0.0 }
 0x184   :  { %v495_v60 = vadd.f32 %v494_v29, %v493_v59  ;;  %v510_v61 = vadd.f32 %v509_v22, %v508_v24 }
 0x186   :  { %v497_v1 = vadd.f32 %v496_v63, %v495_v60  ;;  %v512_v2 = vadd.f32 %v511_v62, %v510_v61 }
 0x188   :  { %v498_v4 = vrot.slane %v497_v1, 4  ;;  %v514_v5 = vadd.f32 %v513_v3, %v512_v2 }
 0x18a   :  { %v499_v6 = vadd.f32 %v498_v4, %v497_v1  ;;  %v515_v7 = vrot.slane %v514_v5, 4 }
 0x18c   :  { %v500_v8 = vrot.slane %v499_v6, 2  ;;  %v516_v9 = vadd.f32 %v515_v7, %v514_v5 }
 0x18e   :  { %v501_v10 = vadd.f32 %v500_v8, %v499_v6  ;;  %v517_v11 = vrot.slane %v516_v9, 2 }
 0x190   :  { %v502_v12 = vrot.slane %v501_v10, 1  ;;  %v518_v14 = vadd.f32 %v517_v11, %v516_v9 }
 0x192   :  { %v519_v15 = vrot.slane %v518_v14, 1  ;;  %v503_v16 = vadd.f32 %v502_v12, %v501_v10 }
 0x194   :  { %v520_v17 = vadd.f32 %v519_v15, %v518_v14 }
 0x196   :  { %v522_v18 = vsel %vm521_vm15, %v503_v16, %v520_v17 }
 0x197   :  { %524 = vst.msk [vmem:[%s889_s9] sm:$0x3] %vm523_vm0, %v522_v18 }

// kernel: mfl_net_pallas.7
= control target key start
LH: loop header
LB: loop body
LE: loop exit
PB: predicated region body
PF: predicated region fallthrough
CT: control target
= control target key end

     0   :  { %s1189_s0 = inlined_call_operand.vmem [shape: bf16[32,32], index: 0, kind: input, shape index: {}]   ;;  %s1190_s1 = inlined_call_operand.vmem [shape: f32[1,2,32], index: 1, kind: input, shape index: {}]   ;;  %s1191_s2 = inlined_call_operand.vmem [shape: f32[1,32], index: 2, kind: input, shape index: {}]   ;;  %s1192_s3 = inlined_call_operand.vmem [shape: f32[1,32], index: 3, kind: input, shape index: {}]   ;;  %s1193_s4 = inlined_call_operand.vmem [shape: bf16[3,32,32], index: 4, kind: input, shape index: {}]   ;;  %s1194_s5 = inlined_call_operand.vmem [shape: f32[1,32], index: 5, kind: input, shape index: {}]   ;;  %s1195_s6 = inlined_call_operand.vmem [shape: bf16[3,32,32], index: 6, kind: input, shape index: {}]   ;;  %s1196_s7 = inlined_call_operand.vmem [shape: f32[1,32], index: 7, kind: input, shape index: {}]   ;;  %s1197_s8 = inlined_call_operand.vmem [shape: f32[1,32], index: 8, kind: input, shape index: {}]   ;;  %s1198_s9 = inlined_call_operand.<no memory space> [shape: f32[1,1], index: 9, kind: input, shape index: {}]   ;;  %s1199_s10 = inlined_call_operand.hbm [shape: f32[2,1,8], index: 10, kind: output, shape index: {}]  }
   0x1   :  { %v15_v0 = vstv %s1198_s9 }
   0x2   :  { %16 = vst [vmem:[#allocation2] sm:$0x1] %v15_v0 }
   0x3   :  { %v841_v1 = vld [vmem:[%s1193_s4 + $0x8] sm:$0xff]  ;;  %v47_v2 = vld [vmem:[%s1190_s1] sm:$0x3] }
   0x4   :  { %185 = vmatpush.bf16.msra.mxu0 %v841_v1  ;;  %861 = vmatpush.bf16.msra.mxu2 %v841_v1  ;;  %v840_v3 = vld [vmem:[%s1193_s4] sm:$0xff]  ;;  %v49_v4 = vmul.f32 0.03125, %v47_v2 }
   0x5   :  { %17 = vsyncpa [#allocation4], 0  ;;  %v845_v10 = vld [vmem:[%s1193_s4 + $0x28] sm:$0xff]  ;;  %v844_v13 = vld [vmem:[%s1193_s4 + $0x20] sm:$0xff]  ;;  %vm172_vm3 = vcmask 261120   ;;  %v77_v54 = vlaneseq  ;;  %vm517_vm11 = vcmask 254976  }
   0x6   :  { %v50_v5 = vmul.f32 %v49_v4, %v49_v4  ;;  %863 = vmatpush.bf16.msra.mxu3 %v845_v10  ;;  %226 = vmatpush.bf16.msra.mxu1 %v845_v10  ;;  %v843_v14 = vld [vmem:[%s1193_s4 + $0x18] sm:$0xff]  ;;  %v842_v16 = vld [vmem:[%s1193_s4 + $0x10] sm:$0xff]  ;;  %v986_v21 = vld [vmem:[%s1189_s0] sm:$0xff]   ;;  %vm662_vm15 = vcmask 1041409   ;;  %s748_s27 = sshll.u32 %s1199_s10, 4  ;;  %s902_s28 = smov 16   ;;  %s749_s27 = int_to_ptr.hbm [resolvable:$true] %s748_s27 }
   0x7   :  { %v56_v22 = vld [vmem:[%s1191_s2] sm:$0x1]  ;;  %v994_v23 = vld [vmem:[%s1189_s0 + $0x8] sm:$0xff]   ;;  %v854_v25 = vunpack.c.l.bf16 %v986_v21  ;;  %v855_v26 = vunpack.c.h.bf16 %v986_v21  ;;  %v849_v47 = vld [vmem:[%s1195_s6 + $0x18] sm:$0xff]  ;;  %v1035_v56 = vshrl.u32 %v77_v54, 7  ;;  %s903_s29 = smov 1  }
   0x8   :  { %186 = vmatpush.bf16.msra.mxu0 %v840_v3  ;;  %862 = vmatpush.bf16.msra.mxu2 %v840_v3  ;;  %v52_v6 = vrot.slane %v50_v5, 7  ;;  %v858_v28 = vunpack.c.l.bf16 %v994_v23  ;;  %v74_v29 = vld [vmem:[%s1192_s3] sm:$0x1]  ;;  %v859_v30 = vunpack.c.h.bf16 %v994_v23  ;;  %v847_v45 = vld [vmem:[%s1195_s6 + $0x8] sm:$0xff]  ;;  %v848_v50 = vld [vmem:[%s1195_s6 + $0x10] sm:$0xff] }
   0x9   :  { %v851_v46 = vld [vmem:[%s1195_s6 + $0x28] sm:$0xff]  ;;  %v846_v48 = vld [vmem:[%s1195_s6] sm:$0xff]  ;;  %v86_v57 = vand.u32 15, %v1035_v56  ;;  %v79_v59 = vadd.s32 8, %v1035_v56  ;;  %vm277_vm5 = vcmp.lt.s32.totalorder %v1035_v56, 1  ;;  %vm302_vm6 = vcmp.lt.s32.totalorder %v1035_v56, 7 }
   0xa   :  { %v54_v7 = vsub.f32 %v49_v4, %v52_v6  ;;  %864 = vmatpush.bf16.msra.mxu3 %v844_v13  ;;  %227 = vmatpush.bf16.msra.mxu1 %v844_v13  ;;  %v850_v49 = vld [vmem:[%s1195_s6 + $0x20] sm:$0xff] }
   0xb   :  { %v870_v62 = vld [vmem:[%s1194_s5] ss:$0 sm:$0xff]  ;;  %vm1042_vm4 = vcmp.eq.s32.totalorder %v86_v57, 0  ;;  %v93_v2 = vand.u32 15, %v79_v59 }
   0xc   :  { %v55_v8 = vmax.f32 %v54_v7, 0.0  ;;  %260 = vmatpush.bf16.msrb.mxu2 %v843_v14  ;;  %394 = vmatpush.bf16.msrb.mxu0 %v851_v46  ;;  %v871_v59 = vld [vmem:[%s1196_s7] ss:$0 sm:$0xff] }
   0xd   :  { %vm1054_vm7 = vcmp.eq.s32.totalorder %v93_v2, 15 }
   0xe   :  { %v57_v9 = vadd.f32 1e-05, %v55_v8  ;;  %353 = vmatpush.bf16.msrb.mxu3 %v847_v45  ;;  %428 = vmatpush.bf16.msrb.mxu1 %v849_v47 }
  0x10   :  { %872 = vrsqrt.f32 %v57_v9  ;;  %vm64_vm0 = vweird.f32 %v57_v9  ;;  %261 = vmatpush.bf16.msrb.mxu2 %v842_v16  ;;  %395 = vmatpush.bf16.msrb.mxu0 %v850_v49 }
  0x12   :  { %354 = vmatpush.bf16.msrb.mxu3 %v846_v48  ;;  %429 = vmatpush.bf16.msrb.mxu1 %v848_v50 }
  0x16   :  { %v873_v11 = vpop.eup %872 }
  0x17   :  { %v59_v12 = vmul.f32 %v873_v11, %v57_v9  ;;  %vm65_vm1 = vweird.f32 %v873_v11 }
  0x18   :  { %vm66_vm2 = vmor %vm64_vm0, %vm65_vm1  ;;  %vm664_vm0 = vcmask 1042434   ;;  %vm666_vm1 = vcmask 1043459  }
  0x19   :  { %v60_v15 = vmul.f32 %v873_v11, %v59_v12 }
  0x1b   :  { %v61_v17 = vmul.f32 0.5, %v60_v15 }
  0x1d   :  { %v62_v18 = vsub.f32 1.5, %v61_v17 }
  0x1f   :  { %v63_v19 = vmul.f32 %v873_v11, %v62_v18 }
  0x21   :  { %v67_v20 = vsel %vm66_vm2, %v873_v11, %v63_v19  ;;  %vm668_vm2 = vcmask 1044484  }
  0x22   :  { %69 = vst [vmem:[#allocation1] sm:$0xff] %v67_v20  ;;  %v80_v20 = vadd.s32 16, %v1035_v56 }
  0x29   :  { %v71_v24 = vld [vmem:[#allocation1 + $0x1] ss:$9 sm:$0xff] }
  0x2a   :  { %v73_v27 = vmul.f32 %v71_v24, %v56_v22 }
  0x2c   :  { %v75_v31 = vmul.f32 %v73_v27, %v49_v4  ;;  %v141_v32 = vperm.slane %v73_v27, 0 }
  0x2e   :  { %v76_v33 = vsub.f32 %v74_v29, %v75_v31  ;;  %v143_v34 = vmul.f32 %v854_v25, %v141_v32  ;;  %v144_v35 = vmul.f32 %v855_v26, %v141_v32  ;;  %v145_v36 = vmul.f32 %v858_v28, %v141_v32 }
  0x2f   :  { %v146_v37 = vmul.f32 %v859_v30, %v141_v32  ;;  %v100_v29 = vand.u32 15, %v80_v20  ;;  %v81_v32 = vadd.s32 24, %v1035_v56 }
  0x30   :  { %v148_v38 = vperm.slane %v76_v33, 0 }
  0x31   :  { %vm1069_vm8 = vcmp.eq.s32.totalorder %v100_v29, 0 }
  0x32   :  { %v150_v39 = vadd.f32 %v148_v38, %v143_v34  ;;  %v151_v40 = vadd.f32 %v148_v38, %v144_v35  ;;  %v152_v41 = vadd.f32 %v148_v38, %v145_v36  ;;  %v153_v42 = vadd.f32 %v148_v38, %v146_v37 }
  0x34   :  { %v154_v43 = vpack.c.bf16 %v151_v40, %v150_v39  ;;  %v155_v44 = vpack.c.bf16 %v153_v42, %v152_v41  ;;  %v107_v39 = vand.u32 15, %v81_v32 }
  0x36   :  { %768 = vmatmul.msk.bf16.vlgmr.msra.gmra.mxu0 %vm172_vm3, %v154_v43  ;;  %769 = vmatmul.msk.bf16.vlgmr.msra.gmra.mxu2 %vm172_vm3, %v155_v44  ;;  %vm1079_vm9 = vcmp.eq.s32.totalorder %v107_v39, 15 }
  0x37   :  { %787 = vmatmul.msk.bf16.vlgmr.msra.gmra.mxu3 %vm172_vm3, %v155_v44  ;;  %786 = vmatmul.msk.bf16.vlgmr.msra.gmra.mxu1 %vm172_vm3, %v154_v43 }
  0x46   :  { %796 = vmatmul.msk.bf16.vlgmr.msrb.gmra.mxu2 %vm172_vm3, %v154_v43 }
  0x56   :  { %797 = vmatmul.msk.bf16.gmra.mxu2 %vm172_vm3, %v155_v44 }
  0xb3   :  { %v188_v55 = vpop.f32.mrf.mxu0 }
  0xb4   :  { %v229_v53 = vpop.f32.mrf.mxu1  ;;  %v273_v60 = vrot.slane %v188_v55, 7 }
  0xb5   :  { %v298_v8 = vrot.slane %v229_v53, 1 }
  0xb9   :  { %v193_v51 = vpop.f32.mrf.mxu2 }
  0xba   :  { %v234_v0 = vpop.f32.mrf.mxu3  ;;  %v275_v34 = vrot.slane %v193_v51, 7 }
  0xbb   :  { %v190_v3 = vpop.f32.mrf.mxu0  ;;  %v300_v4 = vrot.slane %v234_v0, 1 }
  0xbc   :  { %v231_v63 = vpop.f32.mrf.mxu1  ;;  %v274_v9 = vrot.slane %v190_v3, 7 }
  0xbd   :  { %v299_v5 = vrot.slane %v231_v63, 1 }
  0xbe   :  { %v280_v17 = vsel %vm277_vm5, %v273_v60, %v274_v9  ;;  %v279_v38 = vsel %vm277_vm5, %v274_v9, %v275_v34 }
  0xbf   :  { %v304_v12 = vsel %vm302_vm6, %v299_v5, %v300_v4  ;;  %v305_v16 = vsel %vm302_vm6, %v298_v8, %v299_v5  ;;  %v292_v40 = vsel %vm1069_vm8, 0.0, %v279_v38 }
  0xc0   :  { %v316_v19 = vsel %vm1054_vm7, 0.0, %v304_v12 }
  0xc1   :  { %v195_v52 = vpop.f32.mrf.mxu2 }
  0xc2   :  { %v276_v61 = vrot.slane %v195_v52, 7  ;;  %v236_v33 = vpop.f32.mrf.mxu3 }
  0xc3   :  { %v301_v36 = vrot.slane %v236_v33, 1 }
  0xc4   :  { %v281_v7 = vsel %vm277_vm5, %v276_v61, %v273_v60  ;;  %v278_v46 = vsel %vm277_vm5, %v275_v34, %v276_v61 }
  0xc5   :  { %v290_v10 = vsel %vm1042_vm4, 0.0, %v281_v7  ;;  %v306_v42 = vsel %vm302_vm6, %v301_v36, %v298_v8  ;;  %v303_v48 = vsel %vm302_vm6, %v300_v4, %v301_v36 }
  0xc6   :  { %v318_v49 = vsel %vm1079_vm9, 0.0, %v306_v42 }
  0xc9   :  { %v263_v58 = vpop.f32.mrf.mxu2 }
  0xca   :  { %v264_v6 = vadd.f32 %v870_v62, %v263_v58 }
  0xcc   :  { %v294_v13 = vadd.f32 %v290_v10, %v264_v6 }
  0xce   :  { %v319_v22 = vadd.f32 %v305_v16, %v294_v13 }
  0xd1   :  { %v265_v11 = vpop.f32.mrf.mxu2 }
  0xd2   :  { %v266_v15 = vadd.f32 %v870_v62, %v265_v11 }
  0xd4   :  { %v295_v18 = vadd.f32 %v280_v17, %v266_v15 }
  0xd6   :  { %v320_v24 = vadd.f32 %v316_v19, %v295_v18 }
  0xd8   :  { %v323_v27 = vpack.c.bf16 %v320_v24, %v319_v22 }
  0xd9   :  { %v268_v31 = vpop.f32.mrf.mxu2 }
  0xda   :  { %806 = vmatmul.msk.bf16.vlgmr.msrb.gmra.mxu3 %vm172_vm3, %v323_v27  ;;  %824 = vmatmul.msk.bf16.vlgmr.msrb.gmra.mxu0 %vm172_vm3, %v323_v27  ;;  %v269_v37 = vadd.f32 %v870_v62, %v268_v31 }
  0xdb   :  { %834 = vmatmul.msk.bf16.vlgmr.msrb.gmra.mxu1 %vm172_vm3, %v323_v27 }
  0xdc   :  { %v296_v43 = vadd.f32 %v292_v40, %v269_v37 }
  0xde   :  { %v321_v50 = vadd.f32 %v303_v48, %v296_v43 }
  0xe1   :  { %v270_v41 = vpop.f32.mrf.mxu2 }
  0xe2   :  { %v271_v45 = vadd.f32 %v870_v62, %v270_v41 }
  0xe4   :  { %v297_v47 = vadd.f32 %v278_v46, %v271_v45 }
  0xe6   :  { %v322_v51 = vadd.f32 %v318_v49, %v297_v47 }
  0xe8   :  { %v324_v52 = vpack.c.bf16 %v322_v51, %v321_v50 }
  0xea   :  { %807 = vmatmul.msk.bf16.gmra.mxu3 %vm172_vm3, %v324_v52  ;;  %825 = vmatmul.msk.bf16.gmra.mxu0 %vm172_vm3, %v324_v52 }
  0xeb   :  { %835 = vmatmul.msk.bf16.gmra.mxu1 %vm172_vm3, %v324_v52 }
 0x157   :  { %v397_v53 = vpop.f32.mrf.mxu0 }
 0x158   :  { %v431_v54 = vpop.f32.mrf.mxu1  ;;  %v457_v24 = vrot.slane %v397_v53, 1 }
 0x159   :  { %v432_v37 = vadd.f32 %v871_v59, %v431_v54 }
 0x15d   :  { %v356_v55 = vpop.f32.mrf.mxu3 }
 0x15e   :  { %v441_v61 = vrot.slane %v356_v55, 7 }
 0x15f   :  { %v399_v57 = vpop.f32.mrf.mxu0 }
 0x160   :  { %v433_v58 = vpop.f32.mrf.mxu1  ;;  %v458_v2 = vrot.slane %v399_v57, 1 }
 0x161   :  { %v434_v63 = vadd.f32 %v871_v59, %v433_v58 }
 0x165   :  { %v358_v60 = vpop.f32.mrf.mxu3 }
 0x166   :  { %v442_v62 = vrot.slane %v358_v60, 7 }
 0x167   :  { %v402_v0 = vpop.f32.mrf.mxu0 }
 0x168   :  { %v447_v3 = vsel %vm277_vm5, %v441_v61, %v442_v62  ;;  %v459_v4 = vrot.slane %v402_v0, 1  ;;  %v436_v7 = vpop.f32.mrf.mxu1 }
 0x169   :  { %v454_v5 = vadd.f32 %v447_v3, %v434_v63  ;;  %v437_v16 = vadd.f32 %v871_v59, %v436_v7 }
 0x16a   :  { %v462_v6 = vsel %vm302_vm6, %v458_v2, %v459_v4 }
 0x16b   :  { %v466_v8 = vsel %vm1054_vm7, 0.0, %v462_v6  ;;  %vm701_vm7 = vcmask 57344  }
 0x16c   :  { %v470_v9 = vadd.f32 %v466_v8, %v454_v5 }
 0x16d   :  { %v361_v10 = vpop.f32.mrf.mxu3 }
 0x16e   :  { %vm474_vm10 = vcmp.ge.f32.partialorder %v470_v9, 0.0  ;;  %v478_v11 = vmul.f32 0.01, %v470_v9  ;;  %v443_v12 = vrot.slane %v361_v10, 7 }
 0x16f   :  { %v404_v13 = vpop.f32.mrf.mxu0 }
 0x170   :  { %v482_v15 = vsel %vm474_vm10, %v470_v9, %v478_v11  ;;  %v446_v17 = vsel %vm277_vm5, %v442_v62, %v443_v12  ;;  %v460_v18 = vrot.slane %v404_v13, 1  ;;  %v438_v34 = vpop.f32.mrf.mxu1 }
 0x171   :  { %v486_v19 = vadd.f32 %v855_v26, %v482_v15  ;;  %v451_v14 = vsel %vm1069_vm8, 0.0, %v446_v17  ;;  %v463_v26 = vsel %vm302_vm6, %v457_v24, %v458_v2  ;;  %v439_v42 = vadd.f32 %v871_v59, %v438_v34 }
 0x172   :  { %v455_v20 = vadd.f32 %v451_v14, %v437_v16  ;;  %v461_v22 = vsel %vm302_vm6, %v459_v4, %v460_v18  ;;  %v464_v41 = vsel %vm302_vm6, %v460_v18, %v457_v24  ;;  %vm674_vm6 = vcmask 1047559  }
 0x173   :  { %v496_v27 = vrot.slane %v486_v19, 2  ;;  %v546_v29 = vsel %vm517_vm11, %v486_v19, 0.0  ;;  %v497_v31 = vrot.slane %v486_v19, 4  ;;  %v498_v36 = vrot.slane %v486_v19, 6 }
 0x174   :  { %v547_v32 = vrot.slane %v546_v29, 4  ;;  %v471_v33 = vadd.f32 %v461_v22, %v455_v20  ;;  %v468_v54 = vsel %vm1079_vm9, 0.0, %v464_v41 }
 0x175   :  { %v363_v38 = vpop.f32.mrf.mxu3  ;;  %v553_v40 = vsel %vm517_vm11, %v496_v27, 0.0  ;;  %v1116_v43 = vsel %vm517_vm11, %v497_v31, 0.0  ;;  %v1119_v45 = vsel %vm517_vm11, %v498_v36, 0.0 }
 0x176   :  { %vm475_vm12 = vcmp.ge.f32.partialorder %v471_v33, 0.0  ;;  %v479_v35 = vmul.f32 0.01, %v471_v33  ;;  %v444_v39 = vrot.slane %v363_v38, 7  ;;  %v548_v49 = vadd.f32 %v547_v32, %v546_v29 }
 0x177   :  { %v554_v53 = vrot.slane %v553_v40, 4  ;;  %v561_v57 = vrot.slane %v1116_v43, 4  ;;  %v568_v58 = vrot.slane %v1119_v45, 4 }
 0x178   :  { %v483_v46 = vsel %vm475_vm12, %v471_v33, %v479_v35  ;;  %v445_v47 = vsel %vm277_vm5, %v443_v12, %v444_v39  ;;  %v448_v48 = vsel %vm277_vm5, %v444_v39, %v441_v61  ;;  %v549_v1 = vrot.slane %v548_v49, 2 }
 0x179   :  { %v487_v50 = vadd.f32 %v858_v28, %v483_v46  ;;  %v449_v51 = vsel %vm1042_vm4, 0.0, %v448_v48  ;;  %v456_v52 = vadd.f32 %v445_v47, %v439_v42  ;;  %v555_v3 = vadd.f32 %v554_v53, %v553_v40 }
 0x17a   :  { %v453_v55 = vadd.f32 %v449_v51, %v432_v37  ;;  %v1137_v17 = vadd.f32 %v549_v1, %v548_v49  ;;  %vm670_vm4 = vcmask 1045509   ;;  %vm672_vm5 = vcmask 1046534  }
 0x17b   :  { %v499_v59 = vrot.slane %v487_v50, 2  ;;  %v500_v56 = vrot.slane %v487_v50, 4  ;;  %v501_v60 = vrot.slane %v487_v50, 6  ;;  %v574_v61 = vsel %vm517_vm11, %v487_v50, 0.0 }
 0x17c   :  { %v575_v62 = vrot.slane %v574_v61, 4  ;;  %v469_v28 = vadd.f32 %v463_v26, %v453_v55  ;;  %v472_v63 = vadd.f32 %v468_v54, %v456_v52  ;;  %v556_v18 = vrot.slane %v555_v3, 2 }
 0x17d   :  { %v581_v0 = vsel %vm517_vm11, %v499_v59, 0.0  ;;  %v588_v2 = vsel %vm517_vm11, %v500_v56, 0.0  ;;  %v595_v44 = vsel %vm517_vm11, %v501_v60, 0.0  ;;  %v551_v29 = vrot.slane %v1137_v17, 1 }
 0x17e   :  { %v576_v4 = vadd.f32 %v575_v62, %v574_v61  ;;  %v582_v5 = vrot.slane %v581_v0, 4  ;;  %v589_v6 = vrot.slane %v588_v2, 4  ;;  %v596_v7 = vrot.slane %v595_v44, 4 }
 0x17f   :  { %vm473_vm13 = vcmp.ge.f32.partialorder %v469_v28, 0.0  ;;  %vm476_vm14 = vcmp.ge.f32.partialorder %v472_v63, 0.0  ;;  %v477_v8 = vmul.f32 0.01, %v469_v28  ;;  %v480_v9 = vmul.f32 0.01, %v472_v63 }
 0x180   :  { %v577_v10 = vrot.slane %v576_v4, 2  ;;  %v583_v11 = vadd.f32 %v582_v5, %v581_v0  ;;  %v590_v12 = vadd.f32 %v589_v6, %v588_v2  ;;  %v597_v13 = vadd.f32 %v596_v7, %v595_v44 }
 0x181   :  { %v481_v15 = vsel %vm473_vm13, %v469_v28, %v477_v8  ;;  %v484_v16 = vsel %vm476_vm14, %v472_v63, %v480_v9  ;;  %v1144_v31 = vadd.f32 %v556_v18, %v555_v3 }
 0x182   :  { %v578_v19 = vadd.f32 %v577_v10, %v576_v4  ;;  %v584_v14 = vrot.slane %v583_v11, 2  ;;  %v591_v20 = vrot.slane %v590_v12, 2  ;;  %v485_v22 = vadd.f32 %v854_v25, %v481_v15 }
 0x183   :  { %v488_v24 = vadd.f32 %v859_v30, %v484_v16  ;;  %v598_v27 = vrot.slane %v597_v13, 2 }
 0x184   :  { %v579_v32 = vrot.slane %v578_v19, 1  ;;  %v585_v33 = vadd.f32 %v584_v14, %v583_v11  ;;  %v592_v34 = vadd.f32 %v591_v20, %v590_v12  ;;  %v493_v36 = vrot.slane %v485_v22, 2 }
 0x185   :  { %v494_v37 = vrot.slane %v485_v22, 4  ;;  %v495_v26 = vrot.slane %v485_v22, 6  ;;  %v502_v38 = vrot.slane %v488_v24, 2  ;;  %v518_v35 = vsel %vm517_vm11, %v485_v22, 0.0 }
 0x186   :  { %v580_v21 = vadd.f32 %v579_v32, %v578_v19  ;;  %v586_v25 = vrot.slane %v585_v33, 1  ;;  %v519_v39 = vrot.slane %v518_v35, 4  ;;  %v525_v23 = vsel %vm517_vm11, %v493_v36, 0.0 }
 0x187   :  { %v526_v30 = vrot.slane %v525_v23, 4  ;;  %v532_v40 = vsel %vm517_vm11, %v494_v37, 0.0  ;;  %v539_v41 = vsel %vm517_vm11, %v495_v26, 0.0  ;;  %v602_v42 = vsel %vm517_vm11, %v488_v24, 0.0 }
 0x188   :  { %v520_v46 = vadd.f32 %v519_v39, %v518_v35  ;;  %v533_v47 = vrot.slane %v532_v40, 4  ;;  %v540_v48 = vrot.slane %v539_v41, 4  ;;  %v603_v49 = vrot.slane %v602_v42, 4 }
 0x189   :  { %v527_v50 = vadd.f32 %v526_v30, %v525_v23  ;;  %v503_v51 = vrot.slane %v488_v24, 4  ;;  %v504_v52 = vrot.slane %v488_v24, 6  ;;  %v587_v53 = vadd.f32 %v586_v25, %v585_v33 }
 0x18a   :  { %v521_v54 = vrot.slane %v520_v46, 2  ;;  %v534_v55 = vadd.f32 %v533_v47, %v532_v40  ;;  %v593_v59 = vrot.slane %v592_v34, 1  ;;  %v599_v56 = vadd.f32 %v598_v27, %v597_v13 }
 0x18b   :  { %v528_v60 = vrot.slane %v527_v50, 2  ;;  %v604_v61 = vadd.f32 %v603_v49, %v602_v42  ;;  %v609_v62 = vsel %vm517_vm11, %v502_v38, 0.0  ;;  %v616_v28 = vsel %vm517_vm11, %v503_v51, 0.0 }
 0x18c   :  { %v522_v63 = vadd.f32 %v521_v54, %v520_v46  ;;  %v594_v1 = vadd.f32 %v593_v59, %v592_v34  ;;  %v600_v0 = vrot.slane %v599_v56, 1  ;;  %v610_v2 = vrot.slane %v609_v62, 4 }
 0x18d   :  { %v605_v44 = vrot.slane %v604_v61, 2  ;;  %v617_v3 = vrot.slane %v616_v28, 4  ;;  %v623_v4 = vsel %vm517_vm11, %v504_v52, 0.0  ;;  %v638_v5 = vmul.f32 0.5, %v580_v21 }
 0x18e   :  { %v601_v6 = vadd.f32 %v600_v0, %v599_v56  ;;  %v611_v7 = vadd.f32 %v610_v2, %v609_v62  ;;  %v624_v8 = vrot.slane %v623_v4, 4  ;;  %v639_v9 = vmul.f32 0.5, %v587_v53 }
 0x18f   :  { %v606_v10 = vadd.f32 %v605_v44, %v604_v61  ;;  %v618_v11 = vadd.f32 %v617_v3, %v616_v28  ;;  %v640_v12 = vmul.f32 0.5, %v594_v1  ;;  %v523_v13 = vrot.slane %v522_v63, 1 }
 0x190   :  { %v612_v15 = vrot.slane %v611_v7, 2  ;;  %v625_v16 = vadd.f32 %v624_v8, %v623_v4  ;;  %v641_v18 = vmul.f32 0.5, %v601_v6  ;;  %v711_v19 = vsel %vm662_vm15, %v639_v9, %v638_v5  ;;  %v647_v5 = vld [vmem:[#allocation2] sm:$0x1] }
 0x191   :  { %v607_v14 = vrot.slane %v606_v10, 1  ;;  %v619_v20 = vrot.slane %v618_v11, 2  ;;  %v712_v22 = vsel %vm664_vm0, %v640_v12, %v711_v19  ;;  %v524_v24 = vadd.f32 %v523_v13, %v522_v63 }
 0x192   :  { %v613_v27 = vadd.f32 %v612_v15, %v611_v7  ;;  %v626_v32 = vrot.slane %v625_v16, 2  ;;  %v713_v33 = vsel %vm666_vm1, %v641_v18, %v712_v22  ;;  %v529_v34 = vadd.f32 %v528_v60, %v527_v50 }
 0x193   :  { %v608_v36 = vadd.f32 %v607_v14, %v606_v10  ;;  %v620_v37 = vadd.f32 %v619_v20, %v618_v11  ;;  %v535_v26 = vrot.slane %v534_v55, 2  ;;  %v541_v38 = vadd.f32 %v540_v48, %v539_v41 }
 0x194   :  { %v614_v35 = vrot.slane %v613_v27, 1  ;;  %v627_v21 = vadd.f32 %v626_v32, %v625_v16  ;;  %v530_v25 = vrot.slane %v529_v34, 1  ;;  %v552_v39 = vadd.f32 %v551_v29, %v1137_v17 }
 0x195   :  { %v621_v23 = vrot.slane %v620_v37, 1  ;;  %v642_v30 = vmul.f32 0.5, %v608_v36  ;;  %v536_v40 = vadd.f32 %v535_v26, %v534_v55  ;;  %v542_v42 = vrot.slane %v541_v38, 2 }
 0x196   :  { %v615_v46 = vadd.f32 %v614_v35, %v613_v27  ;;  %v628_v47 = vrot.slane %v627_v21, 1  ;;  %v531_v49 = vadd.f32 %v530_v25, %v529_v34  ;;  %v558_v50 = vrot.slane %v1144_v31, 1 }
 0x197   :  { %v622_v51 = vadd.f32 %v621_v23, %v620_v37  ;;  %v714_v52 = vsel %vm668_vm2, %v642_v30, %v713_v33  ;;  %v537_v41 = vrot.slane %v536_v40, 1  ;;  %v543_v48 = vadd.f32 %v542_v42, %v541_v38 }
 0x198   :  { %v629_v53 = vadd.f32 %v628_v47, %v627_v21  ;;  %v643_v54 = vmul.f32 0.5, %v615_v46  ;;  %v559_v59 = vadd.f32 %v558_v50, %v1144_v31  ;;  %v562_v17 = vadd.f32 %v561_v57, %v1116_v43 }
 0x199   :  { %v644_v29 = vmul.f32 0.5, %v622_v51  ;;  %v538_v55 = vadd.f32 %v537_v41, %v536_v40  ;;  %v544_v56 = vrot.slane %v543_v48, 1  ;;  %v569_v60 = vadd.f32 %v568_v58, %v1119_v45  ;;  %v646_v58 = vld [vmem:[%s1197_s8] sm:$0x1]  ;;  %s901_s8 = smov [#allocation3]  }
 0x19a   :  { %v645_v61 = vmul.f32 0.5, %v629_v53  ;;  %v715_v62 = vsel %vm670_vm4, %v643_v54, %v714_v52  ;;  %v563_v28 = vrot.slane %v562_v17, 2  ;;  %v630_v63 = vmul.f32 0.5, %v524_v24  ;;  %s746_s24 = sshll.u32 %s901_s8, 4  ;;  %s747_s24 = int_to_ptr.vmem [resolvable:$true] %s746_s24 }
 0x19b   :  { %v716_v1 = vsel %vm672_vm5, %v644_v29, %v715_v62  ;;  %v545_v0 = vadd.f32 %v544_v56, %v543_v48  ;;  %v570_v31 = vrot.slane %v569_v60, 2  ;;  %v631_v2 = vmul.f32 0.5, %v531_v49 }
 0x19c   :  { %v717_v44 = vsel %vm674_vm6, %v645_v61, %v716_v1  ;;  %v564_v43 = vadd.f32 %v563_v28, %v562_v17  ;;  %v632_v57 = vmul.f32 0.5, %v538_v55  ;;  %v634_v7 = vmul.f32 0.5, %v552_v39 }
 0x19d   :  { %838 = vmatpush.xpose.msk.msra.mxu3 %vm172_vm3, %v717_v44  ;;  %v571_v3 = vadd.f32 %v570_v31, %v569_v60  ;;  %v633_v4 = vmul.f32 0.5, %v545_v0  ;;  %v663_v45 = vsel %vm662_vm15, %v631_v2, %v630_v63  ;;  %v635_v10 = vmul.f32 0.5, %v559_v59 }
 0x19e   :  { %v565_v6 = vrot.slane %v564_v43, 1  ;;  %v665_v8 = vsel %vm664_vm0, %v632_v57, %v663_v45  ;;  %v900_v12 = vmov 0  }
 0x19f   :  { %v572_v9 = vrot.slane %v571_v3, 1  ;;  %v667_v11 = vsel %vm666_vm1, %v633_v4, %v665_v8  ;;  %869 = vset.pattern.permute.xlu0 %v900_v12 }
 0x1a0   :  { %v566_v13 = vadd.f32 %v565_v6, %v564_v43  ;;  %v669_v15 = vsel %vm668_vm2, %v634_v7, %v667_v11  ;;  %839 = vmatmul.msk.f32.vlgmr.msra.gmra.mxu3 %vm172_vm3, %v646_v58  ;;  %650 = vperm.xlu0 %869, %v647_v5  }
 0x1a1   :  { %v573_v16 = vadd.f32 %v572_v9, %v571_v3  ;;  %v671_v18 = vsel %vm670_vm4, %v635_v10, %v669_v15 }
 0x1a2   :  { %v636_v19 = vmul.f32 0.5, %v566_v13 }
 0x1a3   :  { %v637_v14 = vmul.f32 0.5, %v573_v16 }
 0x1a4   :  { %v673_v20 = vsel %vm672_vm5, %v636_v19, %v671_v18 }
 0x1a5   :  { %v675_v22 = vsel %vm674_vm6, %v637_v14, %v673_v20 }
 0x1a6   :  { %836 = vmatpush.xpose.msk.msra.mxu2 %vm172_vm3, %v675_v22 }
 0x1a9   :  { %837 = vmatmul.msk.f32.vlgmr.msra.gmra.mxu2 %vm172_vm3, %v646_v58 }
 0x212   :  { %v651_v24 = vpop.permute.xlu0 %650 }
 0x213   :  { %v653_v27 = vperm.slane %v651_v24, 0 }
 0x223   :  { %v737_v32 = vpop.f32.mrf.mxu3 }
 0x224   :  { %v738_v33 = vadd.f32 %v737_v32, %v653_v27 }
 0x226   :  { %741 = vst.msk [vmem:[#allocation3 + $0x1] sm:$0x1] %vm701_vm7, %v738_v33 }
 0x22c   :  { %v698_v34 = vpop.f32.mrf.mxu2 }
 0x22d   :  { %v699_v36 = vadd.f32 %v698_v34, %v653_v27 }
 0x22f   :  { %702 = vst.msk [vmem:[#allocation3] sm:$0x1] %vm701_vm7, %v699_v36 }
 0x230   :  { %754 = dma.vmem_to_hbm [thread:$0]  %s747_s24, 32, %s749_s27, [#allocation4], %s902_s28, %s902_s28, %s903_s29  }
 0x231   :  { %898 = dma.done.wait [#allocation4], 32  }
 0x232   :  { %899 = vsyncadd [#allocation4], 4294967264 }
 0x233   :  { %759 = vsyncpa [#allocation4], 1 }

</bundles_post_ra>
